<compile_context>
chip_gen: v7x
topology: tpu7x:2x2x1
jax: 0.10.0
libtpu: 0.0.40
codegen_flags: <defaults>
</compile_context>

<pallas_src>
import jax
import jax.numpy as jnp
from jax import lax
from jax.experimental import pallas as pl
from jax.experimental.pallas import tpu as pltpu


def _self_attn_kernel(x_ref, w_ref, gamma_ref, o_ref):
    """One batch element per grid step, channel-major (C, N) layout.

    x_ref     : (1, C, N)  float32   NCHW input flattened over H*W
    w_ref     : (2C, C)    bfloat16  fused weights [M^T ; Wv], M = Wq^T @ Wk
    gamma_ref : (1, 1)     float32   scalar residual gain (SMEM)
    o_ref     : (1, C, N)  float32
    """
    C = x_ref.shape[1]

    x_cn = x_ref[0]                              # (C, N) f32 (kept f32 for residual)
    x_bf = x_cn.astype(jnp.bfloat16)

    # Fused projection (one MXU pass): rows [0:C] -> (x M)^T, rows [C:2C] -> V.
    proj = lax.dot_general(
        w_ref[...], x_bf, (((1,), (0,)), ((), ())),
        preferred_element_type=jnp.float32)      # (2C, N)
    xm_cn = proj[:C]                             # (C, N) == (x_tokens @ M)^T
    v_cn = proj[C:]                              # (C, N) value projection

    # scores s[i, j] = x_i^T M x_j  (contract the channel dim of both operands,
    # no materialized transpose).
    s = lax.dot_general(
        xm_cn.astype(jnp.bfloat16), x_bf, (((0,), (0,)), ((), ())),
        preferred_element_type=jnp.float32)      # (N, N)

    # Numerically-stable softmax over the last dim (matches nn.Softmax(dim=-1));
    # the divide is done as an EUP reciprocal + multiply.
    s = s - jnp.max(s, axis=-1, keepdims=True)
    p = jnp.exp(s)
    attn = p * pl.reciprocal(jnp.sum(p, axis=-1, keepdims=True), approx=True)

    # out[c, i] = sum_j V[c, j] * attn[i, j]   (rhs-transposed matmul).
    out_cn = lax.dot_general(
        v_cn.astype(jnp.bfloat16), attn.astype(jnp.bfloat16),
        (((1,), (1,)), ((), ())),
        preferred_element_type=jnp.float32)      # (C, N)

    # residual: gamma * out + x   (stored lane-dense along N)
    o_ref[0] = gamma_ref[0, 0] * out_cn + x_cn


def self_attn_pallas(x, Wq, Wk, Wv, gamma):
    """x: (B, C, H, W) float32.  Wq/Wk: (C//8, C), Wv: (C, C) folded-BN 1x1-conv weights."""
    B, C, H, W = x.shape
    N = H * W

    # NCHW -> (B, C, N): reshape only, no transpose / extra HBM pass.
    x_cn = x.reshape(B, C, N).astype(jnp.float32)

    # M = Wq^T @ Wk so that q_i . k_j = x_i^T M x_j ; fuse with Wv into one weight.
    M = Wq.T @ Wk                                                      # (C, C)
    w_fused = jnp.concatenate([M.T, Wv], axis=0).astype(jnp.bfloat16)  # (2C, C)
    gamma2d = jnp.reshape(gamma, (1, 1)).astype(jnp.float32)

    out = pl.pallas_call(
        _self_attn_kernel,
        out_shape=jax.ShapeDtypeStruct((B, C, N), jnp.float32),
        grid_spec=pltpu.PrefetchScalarGridSpec(
            num_scalar_prefetch=0,
            grid=(B,),
            in_specs=[
                pl.BlockSpec((1, C, N), lambda b: (b, 0, 0)),       # x, channel-major
                pl.BlockSpec((2 * C, C), lambda b: (0, 0)),         # fused [M^T ; Wv] (bf16)
                pl.BlockSpec(memory_space=pltpu.MemorySpace.SMEM),  # gamma scalar
            ],
            out_specs=pl.BlockSpec((1, C, N), lambda b: (b, 0, 0)),
        ),
        compiler_params=pltpu.CompilerParams(
            dimension_semantics=("parallel",)),
    )(x_cn, w_fused, gamma2d)

    # (B, C, N) -> NCHW (reshape only).
    return out.reshape(B, C, H, W)


def self_attn_ref(x, Wq, Wk, Wv, gamma):
    """Pure-f32 JAX reference following the PyTorch forward exactly."""
    B, C, H, W = x.shape
    N = H * W
    xf = x.reshape(B, C, N)
    q = jnp.einsum('dc,bcn->bdn', Wq, xf)      # projected_query (pre-permute)
    k = jnp.einsum('dc,bcn->bdn', Wk, xf)      # projected_key
    v = jnp.einsum('dc,bcn->bdn', Wv, xf)      # projected_value
    s = jnp.einsum('bdi,bdj->bij', q, k)       # bmm(q^T, k)
    attn = jax.nn.softmax(s, axis=-1)
    out = jnp.einsum('bcj,bij->bci', v, attn)  # bmm(v, attn^T)
    out = gamma.reshape(()) * out + xf
    return out.reshape(B, C, H, W)


def self_attn_bf16_mirror_ref(x, Wq, Wk, Wv, gamma):
    """JAX reference mirroring the kernel's bf16 operands / fused-weight path."""
    B, C, H, W = x.shape
    N = H * W
    x_cn = x.reshape(B, C, N).astype(jnp.float32)
    M = Wq.T @ Wk
    w = jnp.concatenate([M.T, Wv], axis=0).astype(jnp.bfloat16)
    xb = x_cn.astype(jnp.bfloat16)
    proj = jnp.einsum('kc,bcn->bkn', w, xb, preferred_element_type=jnp.float32)
    xm, v = proj[:, :C, :], proj[:, C:, :]
    s = jnp.einsum('bci,bcj->bij', xm.astype(jnp.bfloat16), xb,
                   preferred_element_type=jnp.float32)
    attn = jax.nn.softmax(s, axis=-1)
    out = jnp.einsum('bcj,bij->bci', v.astype(jnp.bfloat16),
                     attn.astype(jnp.bfloat16), preferred_element_type=jnp.float32)
    out = gamma.reshape(()) * out + x_cn
    return out.reshape(B, C, H, W)


def init_params(key, C):
    """Deterministic params matching self_attn.__init__ (eval-mode BN folded)."""
    C8 = C // 8
    kq, kk, kv = jax.random.split(key, 3)

    def kaiming(k, cout, cin):
        # nn.init.kaiming_normal_ (fan_in, leaky_relu a=0): std = sqrt(2/fan_in)
        std = (2.0 / cin) ** 0.5
        return std * jax.random.normal(k, (cout, cin), jnp.float32)

    eps = 1e-5
    bn_scale = 1.0 / jnp.sqrt(jnp.float32(1.0 + eps))  # BN(mean=0, var=1, w=1, b=0)
    Wq = kaiming(kq, C8, C) * bn_scale     # conv weight (Cout, Cin) from (Cout, Cin, 1, 1)
    Wk = kaiming(kk, C8, C) * bn_scale
    Wv = kaiming(kv, C, C) * bn_scale
    gamma = jnp.zeros((1,), jnp.float32)   # nn.Parameter(torch.zeros(1))
    return Wq, Wk, Wv, gamma


if __name__ == "__main__":
    key = jax.random.PRNGKey(0)
    kx, kp = jax.random.split(key)

    B, C, H, W = 2, 32, 16, 16          # in_channels=32 -> C//8 = 4 ; N = 256 (lane-dense)
    x = jax.random.normal(kx, (B, C, H, W), jnp.float32)
    Wq, Wk, Wv, gamma = init_params(kp, C)

    # Module forward with its initialized gamma (= 0): output must equal x exactly.
    out = self_attn_pallas(x, Wq, Wk, Wv, gamma)
    jax.block_until_ready(out)
    assert out.shape == (B, C, H, W)
    assert jnp.allclose(out, x, atol=1e-6), "gamma=0 residual should return x"

    # Validate the attention path with a nonzero gamma.
    gamma_chk = jnp.array([0.5], jnp.float32)
    out_k = self_attn_pallas(x, Wq, Wk, Wv, gamma_chk)
    out_m = self_attn_bf16_mirror_ref(x, Wq, Wk, Wv, gamma_chk)   # same bf16 math
    out_f = self_attn_ref(x, Wq, Wk, Wv, gamma_chk)               # pure f32 module math
    jax.block_until_ready((out_k, out_m, out_f))

    # Tight check vs. the bf16-mirrored reference; loose check vs. full-f32 reference
    # (bf16 MXU operands on unscaled SAGAN-style scores need a looser tolerance).
    assert jnp.allclose(out_k, out_m, atol=2e-2, rtol=2e-2), "kernel != bf16 reference"
    assert jnp.allclose(out_k, out_f, atol=1e-1, rtol=1e-1), "kernel != f32 reference"

    print("KERNEL_OK")
</pallas_src>

<mosaic_0001>
module attributes {stable_mosaic.version = 11 : i64} {
  func.func @_self_attn_kernel(%arg0: i32, %arg1: memref<1x32x256xf32, #tpu.memory_space<vmem>>, %arg2: memref<64x32xbf16, #tpu.memory_space<vmem>>, %arg3: memref<1x1xf32, #tpu.memory_space<smem>>, %arg4: memref<1x32x256xf32, #tpu.memory_space<vmem>>) attributes {dimension_semantics = [#tpu.dimension_semantics<parallel>], iteration_bounds = array<i64: 2>, scalar_prefetch = 0 : i64, scratch_operands = 0 : i64, tpu.core_type = #tpu.core_type<tc>, window_params = [{transform_indices = @transform_0, window_bounds = array<i64: 1, 32, 256>}, {pipeline_mode = #tpu.pipeline_mode<synchronous>, transform_indices = @transform_1, window_bounds = array<i64: 64, 32>}, {transform_indices = @transform_2, window_bounds = array<i64: 1, 1>}, {transform_indices = @transform_3, window_bounds = array<i64: 1, 32, 256>}]} {
    %c0 = arith.constant 0 : index
    %c0_0 = arith.constant 0 : index
    %c0_1 = arith.constant 0 : index
    %0 = vector.load %arg1[%c0, %c0_0, %c0_1] : memref<1x32x256xf32, #tpu.memory_space<vmem>>, vector<1x32x256xf32>
    %1 = vector.shape_cast %0 : vector<1x32x256xf32> to vector<32x256xf32>
    %2 = arith.truncf %1 : vector<32x256xf32> to vector<32x256xbf16>
    %c0_2 = arith.constant 0 : index
    %c0_3 = arith.constant 0 : index
    %3 = vector.load %arg2[%c0_2, %c0_3] : memref<64x32xbf16, #tpu.memory_space<vmem>>, vector<64x32xbf16>
    %cst = arith.constant dense<0.000000e+00> : vector<64x256xf32>
    %4 = tpu.matmul %3, %2, %cst {dimension_numbers = #tpu.dot_dimension_numbers<[1], [0], [0], [1], [0, 0, 1, 1], [], []>} : vector<64x32xbf16>, vector<32x256xbf16>, vector<64x256xf32> -> vector<64x256xf32>
    %5 = vector.extract_strided_slice %4 {offsets = [0, 0], sizes = [32, 256], strides = [1, 1]} : vector<64x256xf32> to vector<32x256xf32>
    %6 = vector.extract_strided_slice %4 {offsets = [32, 0], sizes = [32, 256], strides = [1, 1]} : vector<64x256xf32> to vector<32x256xf32>
    %7 = arith.truncf %5 : vector<32x256xf32> to vector<32x256xbf16>
    %cst_4 = arith.constant dense<0.000000e+00> : vector<256x256xf32>
    %8 = tpu.matmul %7, %2, %cst_4 {dimension_numbers = #tpu.dot_dimension_numbers<[0], [0], [1], [1], [0, 1, 1, 1], [], []>} : vector<32x256xbf16>, vector<32x256xbf16>, vector<256x256xf32> -> vector<256x256xf32>
    %cst_5 = arith.constant dense<0xFF800000> : vector<256xf32>
    %9 = vector.multi_reduction <maximumf>, %8, %cst_5 [1] : vector<256x256xf32> to vector<256xf32>
    %10 = vector.shape_cast %9 : vector<256xf32> to vector<256x1xf32>
    %11 = vector.broadcast %10 : vector<256x1xf32> to vector<256x256xf32>
    %12 = arith.subf %8, %11 : vector<256x256xf32>
    %13 = math.exp %12 : vector<256x256xf32>
    %cst_6 = arith.constant dense<0.000000e+00> : vector<256xf32>
    %14 = vector.multi_reduction <add>, %13, %cst_6 [1] : vector<256x256xf32> to vector<256xf32>
    %15 = vector.shape_cast %14 : vector<256xf32> to vector<256x1xf32>
    %16 = tpu.reciprocal %15 {approx = true} : vector<256x1xf32> -> vector<256x1xf32>
    %17 = vector.broadcast %16 : vector<256x1xf32> to vector<256x256xf32>
    %18 = arith.mulf %13, %17 : vector<256x256xf32>
    %19 = arith.truncf %6 : vector<32x256xf32> to vector<32x256xbf16>
    %20 = arith.truncf %18 : vector<256x256xf32> to vector<256x256xbf16>
    %cst_7 = arith.constant dense<0.000000e+00> : vector<32x256xf32>
    %21 = tpu.matmul %19, %20, %cst_7 {dimension_numbers = #tpu.dot_dimension_numbers<[1], [1], [0], [0], [0, 0, 1, 0], [], []>} : vector<32x256xbf16>, vector<256x256xbf16>, vector<32x256xf32> -> vector<32x256xf32>
    %c0_8 = arith.constant 0 : index
    %c0_9 = arith.constant 0 : index
    %22 = memref.load %arg3[%c0_8, %c0_9] : memref<1x1xf32, #tpu.memory_space<smem>>
    %23 = vector.broadcast %22 : f32 to vector<32x256xf32>
    %24 = arith.mulf %23, %21 : vector<32x256xf32>
    %25 = arith.addf %24, %1 : vector<32x256xf32>
    %c0_10 = arith.constant 0 : index
    %c0_11 = arith.constant 0 : index
    %c0_12 = arith.constant 0 : index
    %26 = vector.load %arg4[%c0_10, %c0_11, %c0_12] : memref<1x32x256xf32, #tpu.memory_space<vmem>>, vector<1x32x256xf32>
    %27 = vector.shape_cast %26 : vector<1x32x256xf32> to vector<32x256xf32>
    %28 = vector.shape_cast %25 : vector<32x256xf32> to vector<1x32x256xf32>
    tpu.vector_store %arg4[%c0_10, %c0_11, %c0_12], %28 {strides = array<i32>} : memref<1x32x256xf32, #tpu.memory_space<vmem>>, vector<1x32x256xf32>,
    return
  }
  func.func @transform_0(%arg0: i32) -> (i32, i32, i32) {
    %c0_i32 = arith.constant 0 : i32
    %c0_i32_0 = arith.constant 0 : i32
    %c0_i32_1 = arith.constant 0 : i32
    return %arg0, %c0_i32, %c0_i32_0 : i32, i32, i32
  }
  func.func @transform_1(%arg0: i32) -> (i32, i32) {
    %c0_i32 = arith.constant 0 : i32
    %c0_i32_0 = arith.constant 0 : i32
    %c0_i32_1 = arith.constant 0 : i32
    return %c0_i32, %c0_i32_0 : i32, i32
  }
  func.func @transform_2(%arg0: i32) -> (i32, i32) {
    %c0_i32 = arith.constant 0 : i32
    %c0_i32_0 = arith.constant 0 : i32
    %c0_i32_1 = arith.constant 0 : i32
    return %c0_i32, %c0_i32_0 : i32, i32
  }
  func.func @transform_3(%arg0: i32) -> (i32, i32, i32) {
    %c0_i32 = arith.constant 0 : i32
    %c0_i32_0 = arith.constant 0 : i32
    %c0_i32_1 = arith.constant 0 : i32
    return %arg0, %c0_i32, %c0_i32_0 : i32, i32, i32
  }
}

</mosaic_0001>

<bundles_post_ra>
// kernel: tpu_custom_call.1
= control target key start
LH: loop header
LB: loop body
LE: loop exit
PB: predicated region body
PF: predicated region fallthrough
CT: control target
= control target key end

     0   :  { %s2532_s0 = inlined_call_operand.hbm [shape: f32[2,32,256], index: 0, kind: input, shape index: {}]   ;;  %s2533_s1 = inlined_call_operand.vmem [shape: bf16[64,32], index: 1, kind: input, shape index: {}]   ;;  %s2534_s2 = inlined_call_operand.<no memory space> [shape: f32[1,1], index: 2, kind: input, shape index: {}]   ;;  %s2535_s3 = inlined_call_operand.hbm [shape: f32[2,32,256], index: 3, kind: output, shape index: {}]  }
   0x1   :  { %8 = sst [smem:[#allocation2]] %s2534_s2 }
   0x2   :  { %9 = vsyncpa [#allocation4], 0 }
   0x3   :  { %11 = vsyncpa [#allocation4 + $0x1], 0 }
   0x4   :  { %12 = vsyncpa [#allocation5], 0 }
   0x5   :  { %14 = vsyncpa [#allocation5 + $0x1], 0  ;;  %s1731_s14 = smov 0   ;;  %s1733_s15 = smov 0  }
   0x6   :  { %s1735_s16 = smov 0   ;;  %s1737_s17 = smov 0  }
   0x7 LB: > { %s1752_s2 = sadd.s32 4294967295, %s1699_s17   ;;  %s1276_s18 = sadd.s32 4294967294, %s1699_s17   ;;  %s1699_s17 = sphi %s1737_s17, %s2639_s17   ;;  %s1695_s16 = sphi %s1735_s16, %s2638_s16   ;;  %s1691_s15 = sphi %s1733_s15, %s2637_s15   ;;  %s1687_s14 = sphi %s1731_s14, %s2636_s14  }
   0x8   : > { %s1756_s19 = sadd.s32 1, %s1699_s17   ;;  %s27_s20 = sadd.s32 1, %s1695_s16 }
   0x9   : > { %s24_s21 = ssub.s32 %s1699_s17, %s1756_s19  ;;  %p34_p0 = scmp.ne.s32.totalorder %s1695_s16, %s1691_s15 }
   0xa   : > { %p25_p1 = scmp.eq.s32.totalorder %s24_s21, 0  ;;  %p35_p2 = scmp.eq.s32.totalorder %s1699_s17, 0 }
   0xb   : > { %p40_p3 = scmp.ne.s32.totalorder %s1691_s15, %s1687_s14  ;;  %p41_p4 = scmp.eq.s32.totalorder %s1752_s2, 0 }
   0xc   : > { %s1768_s22 = scalar_select %p25_p1, %s1695_s16, %s27_s20  }
   0xd   : > { %p1770_p5 = por %p35_p2, %p34_p0  ;;  %p1774_p6 = por %p41_p4, %p40_p3 }
   0xe   : > { %p106_p7 = scmp.eq.s32.totalorder %s1752_s2, 1  ;;  %p112_p8 = scmp.eq.s32.totalorder %s1276_s18, 1 }
   0xf   : > { %p1360_p10 = scmp.lt.s32.totalorder %s1699_s17, 2  ;;  %s138_s27 = sand.u32 1, %s1695_s16  }
  0x10   : > { %p1781_p11 = por %p106_p7, %p34_p0  ;;  %p1785_p12 = por %p112_p8, %p40_p3 }
  0x11   : > { %s1314_s28 = sshll.u32 %s1699_s17, 10  ;;  %s1279_s29 = sshll.u32 %s138_s27, 6 }
  0x12   : > { %s2567_s25 = scalar_select %p1781_p11, 1, 0 }
  0x13   : > { %s2568_s26 = scalar_select %p1785_p12, 1, 0 }
  0x14   : > { %s1794_s5 = scalar_lea.hbm %s2532_s0, %s1314_s28  ;;  %s142_s6 = scalar_lea.vmem [#allocation3], %s1279_s29 }
  0x15   : > { %s149_s7 = sshll.u32 %s142_s6, 4  ;;  %p1798_p13 = pnand %p1360_p10, %p1770_p5  ;;  %s1802_s7 = int_to_ptr.vmem [resolvable:$true] %s149_s7 }
  0x16   : > { %s1804_s9 = scalar_lea.sflag [#allocation4], %s138_s27  ;;  %s1603_s10 = scalar_lea.hbm %s1794_s5, 1024 }
  0x17   : > { %p1604_p0 = scmp.ne.s32.totalorder %s1794_s5, %s1603_s10  ;;  %p1605_p1 = pneg %p1798_p13 }
  0x18   : > { %s1608_s13 = scalar_lea.hbm %s2532_s0, 2048  ;;  %p1609_p4 = scmp.lt.u32.totalorder %s1794_s5, %s2532_s0 }
  0x19   : > { %p1606_p2 = pnand %p1605_p1, %p1604_p0  ;;  %p1610_p5 = scmp.lt.u32.totalorder %s1608_s13, %s1603_s10 }
  0x1a   : > { %p1612_p8 = scmp.lt.u32.totalorder %s1603_s10, %s1794_s5 }
  0x1b   : > { %p1607_p3 = pneg %p1606_p2  ;;  %p1611_p7 = por %p1610_p5, %p1609_p4 }
  0x1d   : > { %p1613_p10 = por %p1612_p8, %p1611_p7 }
  0x1f   : > { %p1614_p9 = pnand %p1613_p10, %p1607_p3 }
  0x21   : > { %1617 = shalt.err (!%p1614_p9)
}
  0x22   : > { %s1618_s21 = scalar_lea.vmem %s1802_s7, 1024  ;;  %s1701_s23 = smov [#allocation3]  }
  0x23   : > { %p1619_p0 = scmp.ne.s32.totalorder %s1802_s7, %s1618_s21  ;;  %s1623_s27 = sshll.u32 %s1701_s23, 4  ;;  %s1624_s27 = int_to_ptr.vmem [resolvable:$false] %s1623_s27 }
  0x24   : > { %s1625_s28 = scalar_lea.vmem %s1624_s27, 2048  ;;  %p1626_p11 = scmp.lt.s32.totalorder %s1802_s7, %s1624_s27 }
  0x25   : > { %p1621_p2 = pnand %p1619_p0, %p1605_p1  ;;  %p1627_p4 = scmp.lt.s32.totalorder %s1625_s28, %s1618_s21 }
  0x27   : > { %p1622_p12 = pneg %p1621_p2  ;;  %p1628_p5 = por %p1627_p4, %p1626_p11 }
  0x29   : > { %p1629_p7 = pnand %p1628_p5, %p1622_p12 }
  0x2b   : > { %1632 = shalt.err (!%p1629_p7)
}
  0x2c   : > { %s1702_s29 = smov 256   ;;  %s1703_s30 = smov 16  }
  0x2d   : > { %1355 = dma.hbm_to_vmem [thread:$0]  (!%p1798_p13), %s1794_s5, 1024, %s1802_s7, %s1804_s9, %s1702_s29, %s1702_s29, %s1703_s30  }
  0x2e   : > { %p1282_p9 = scmp.ge.s32.totalorder %s1699_s17, 1  ;;  %p157_p1 = scmp.lt.s32.totalorder %s1699_s17, 3 }
  0x30   : > { %p158_p3 = pnand %p1282_p9, %p157_p1 }
  0x32   : > { %161 = sbr.rel (%p158_p3) target bundleno = 1360 (0x550), region = 32 }
  0x39   : > { %s1835_s4 = sand.u32 1, %s1691_s15  }
  0x3a   : > { %s1283_s6 = sshll.u32 %s1835_s4, 6  ;;  %s164_s10 = scalar_lea.sflag [#allocation4], %s1835_s4 }
  0x3b   : > { %s1841_s11 = scalar_lea.vmem [#allocation3], %s1283_s6 }
  0x3c   : > { %1678 = dma.done.wait (%p1774_p6), %s164_s10, 1024  }
  0x3d   : > { %1680 = vsyncadd (%p1774_p6), %s164_s10, 4294966272  ;;  %v2537_v0 = vmov 0   ;;  %v192_v1 = vld [vmem:[%s1841_s11 + $0x8] sm:$0xff]  ;;  %v194_v2 = vld [vmem:[%s1841_s11 + $0x18] sm:$0xff]  ;;  %vm231_vm0 = vcmask 261120   ;;  %s1163_s20 = sld [smem:[#allocation2]] }
  0x3e   : > { %276 = vmatprep.mubr.bf16.mxu0 %v2537_v0  ;;  %433 = vmatprep.mubr.bf16.mxu1 %v2537_v0  ;;  %v191_v3 = vld [vmem:[%s1841_s11] sm:$0xff]  ;;  %v200_v4 = vpack.c.bf16 %v194_v2, %v192_v1  ;;  %v193_v5 = vld [vmem:[%s1841_s11 + $0x10] sm:$0xff]  ;;  %v196_v6 = vld [vmem:[%s1841_s11 + $0x28] sm:$0xff]  ;;  %s2463_s21 = scalar_lea.vmem [#allocation6], %s1283_s6  ;;  %s1315_s27 = sshll.u32 %s1752_s2, 10 }
  0x3f   : > { %v198_v7 = vld [vmem:[%s1841_s11 + $0x38] sm:$0xff]  ;;  %v199_v8 = vpack.c.bf16 %v193_v5, %v191_v3  ;;  %v195_v10 = vld [vmem:[%s1841_s11 + $0x20] sm:$0xff]  ;;  %v197_v11 = vld [vmem:[%s1841_s11 + $0x30] sm:$0xff]  ;;  %s1203_s23 = sshll.u32 %s2463_s21, 4  ;;  %s2480_s29 = scalar_lea.hbm %s2535_s3, %s1315_s27  ;;  %s2469_s23 = int_to_ptr.vmem [resolvable:$true] %s1203_s23 }
  0x40   : > { %v202_v9 = vpack.c.bf16 %v198_v7, %v196_v6  ;;  %244 = vmatprep.subr.bf16.mxu0 %v200_v4  ;;  %401 = vmatprep.subr.bf16.mxu1 %v200_v4  ;;  %v201_v12 = vpack.c.bf16 %v197_v11, %v195_v10  ;;  %v1399_v13 = vld [vmem:[%s2533_s1] sm:$0xff]   ;;  %v1400_v14 = vld [vmem:[%s2533_s1 + $0x8] sm:$0xff]   ;;  %s1190_s30 = scalar_lea.sflag [#allocation5], %s1835_s4  ;;  %s1633_s6 = scalar_lea.vmem %s2469_s23, 1024 }
  0x41   : > { %245 = vmatpush1.bf16.msra.mxu0 %v199_v8  ;;  %402 = vmatpush1.bf16.msra.mxu1 %v199_v8  ;;  %p1634_p6 = scmp.ne.s32.totalorder %s2469_s23, %s1633_s6  ;;  %p2633_p11 = scmp.ne.s32.totalorder %s2567_s25, 0 }
  0x42   : > { %246 = vmatprep.subr.bf16.mxu0 %v202_v9  ;;  %403 = vmatprep.subr.bf16.mxu1 %v202_v9  ;;  %s1705_s10 = smov [#allocation6]  }
  0x43   : > { %p1635_p12 = pnand %p1634_p6, %p2633_p11  ;;  %s1637_s24 = sshll.u32 %s1705_s10, 4  ;;  %s1638_s24 = int_to_ptr.vmem [resolvable:$false] %s1637_s24 }
  0x44   : > { %s1639_s5 = scalar_lea.vmem %s1638_s24, 2048  ;;  %p1640_p8 = scmp.lt.s32.totalorder %s2469_s23, %s1638_s24 }
  0x45   : > { %247 = vmatpush1.bf16.msra.mxu0 %v201_v12  ;;  %404 = vmatpush1.bf16.msra.mxu1 %v201_v12  ;;  %p1636_p13 = pneg %p1635_p12  ;;  %p1641_p10 = scmp.lt.s32.totalorder %s1639_s5, %s1633_s6 }
  0x47   : > { %p1642_p0 = por %p1641_p10, %p1640_p8 }
  0x48   : > { %1289 = vmatmul.mubr.msk.bf16.vlgmr.msra.gmra.mrb[0].mxu0 %vm231_vm0, %v1399_v13 }
  0x49   : > { %286 = vmatprep.mubr.bf16.mxu0 %v2537_v0  ;;  %p1643_p2 = pnand %p1642_p0, %p1636_p13 }
  0x50   : > { %1290 = vmatmul.mubr.msk.bf16.gmra.mrb[4].mxu0 %vm231_vm0, %v1400_v14 }
  0x51   : > { %296 = vmatprep.mubr.bf16.mxu0 %v2537_v0 }
 0x11b   : > { %v278_v15 = vpop.f32.mrb[0].mxu0 }
 0x11c   : > { %v280_v16 = vpop.f32.mrb[1].mxu0 }
 0x11d   : > { %v282_v17 = vpop.f32.mrb[2].mxu0 }
 0x11e   : > { %v284_v18 = vpop.f32.mrb[3].mxu0  ;;  %v317_v19 = vpack.c.bf16 %v282_v17, %v278_v15 }
 0x11f   : > { %v318_v20 = vpack.c.bf16 %v284_v18, %v280_v16 }
 0x120   : > { %321 = vxpose.xlu0.c.b16.start [1/2] (short) %v317_v19, 128 }
 0x121   : > { %337 = vxpose.xlu1.c.b16.start [1/2] (short) %v318_v20, 128 }
 0x123   : > { %v288_v21 = vpop.f32.mrb[4].mxu0 }
 0x124   : > { %v290_v22 = vpop.f32.mrb[5].mxu0 }
 0x125   : > { %v292_v23 = vpop.f32.mrb[6].mxu0 }
 0x126   : > { %v319_v24 = vpack.c.bf16 %v292_v23, %v288_v21  ;;  %v294_v25 = vpop.f32.mrb[7].mxu0 }
 0x127   : > { %v320_v26 = vpack.c.bf16 %v294_v25, %v290_v22 }
 0x128   : > { %322 = vxpose.xlu0.c.b16.end [2/2] (short) %v319_v24, 128 }
 0x129   : > { %338 = vxpose.xlu1.c.b16.end [2/2] (short) %v320_v26, 128 }
 0x18a   : > { %v329_v27 = vpop.trf.xlu0 }
 0x18b   : > { %1293 = vmatmul.mubr.msk.bf16.vlgmr.msra.gmra.mrb[0].mxu1 %vm231_vm0, %v329_v27  ;;  %v345_v35 = vpop.trf.xlu1 }
 0x18c   : > { %443 = vmatprep.mubr.bf16.mxu1 %v2537_v0 }
 0x18e   : > { %v330_v28 = vpop.trf.xlu0 }
 0x18f   : > { %v346_v36 = vpop.trf.xlu1 }
 0x192   : > { %v331_v29 = vpop.trf.xlu0 }
 0x193   : > { %1294 = vmatmul.mubr.msk.bf16.gmra.mrb[4].mxu1 %vm231_vm0, %v330_v28  ;;  %v347_v37 = vpop.trf.xlu1 }
 0x194   : > { %453 = vmatprep.mubr.bf16.mxu1 %v2537_v0 }
 0x196   : > { %v332_v30 = vpop.trf.xlu0 }
 0x197   : > { %v348_v38 = vpop.trf.xlu1 }
 0x19a   : > { %v333_v31 = vpop.trf.xlu0 }
 0x19b   : > { %1295 = vmatmul.mubr.msk.bf16.gmra.mrb[8].mxu1 %vm231_vm0, %v331_v29  ;;  %v349_v39 = vpop.trf.xlu1 }
 0x19c   : > { %463 = vmatprep.mubr.bf16.mxu1 %v2537_v0 }
 0x19e   : > { %v334_v32 = vpop.trf.xlu0 }
 0x19f   : > { %v350_v40 = vpop.trf.xlu1 }
 0x1a2   : > { %v335_v33 = vpop.trf.xlu0 }
 0x1a3   : > { %1296 = vmatmul.mubr.msk.bf16.gmra.mrb[12].mxu1 %vm231_vm0, %v332_v30  ;;  %v351_v41 = vpop.trf.xlu1 }
 0x1a4   : > { %473 = vmatprep.mubr.bf16.mxu1 %v2537_v0 }
 0x1a6   : > { %v336_v34 = vpop.trf.xlu0 }
 0x1a7   : > { %v352_v42 = vpop.trf.xlu1 }
 0x1ab   : > { %1297 = vmatmul.mubr.msk.bf16.gmra.mrb[16].mxu1 %vm231_vm0, %v333_v31 }
 0x1ac   : > { %483 = vmatprep.mubr.bf16.mxu1 %v2537_v0 }
 0x1b3   : > { %1298 = vmatmul.mubr.msk.bf16.gmra.mrb[20].mxu1 %vm231_vm0, %v334_v32 }
 0x1b4   : > { %493 = vmatprep.mubr.bf16.mxu1 %v2537_v0 }
 0x1bb   : > { %1299 = vmatmul.mubr.msk.bf16.gmra.mrb[24].mxu1 %vm231_vm0, %v335_v33 }
 0x1bc   : > { %503 = vmatprep.mubr.bf16.mxu1 %v2537_v0 }
 0x1c3   : > { %1300 = vmatmul.mubr.msk.bf16.gmra.mrb[28].mxu1 %vm231_vm0, %v336_v34 }
 0x1c4   : > { %513 = vmatprep.mubr.bf16.mxu1 %v2537_v0 }
 0x1cb   : > { %1301 = vmatmul.mubr.msk.bf16.gmra.mrb[32].mxu1 %vm231_vm0, %v345_v35 }
 0x1cc   : > { %523 = vmatprep.mubr.bf16.mxu1 %v2537_v0 }
 0x1d3   : > { %1302 = vmatmul.mubr.msk.bf16.gmra.mrb[36].mxu1 %vm231_vm0, %v346_v36 }
 0x1d4   : > { %533 = vmatprep.mubr.bf16.mxu1 %v2537_v0 }
 0x1db   : > { %1303 = vmatmul.mubr.msk.bf16.gmra.mrb[40].mxu1 %vm231_vm0, %v347_v37 }
 0x1dc   : > { %543 = vmatprep.mubr.bf16.mxu1 %v2537_v0 }
 0x1e3   : > { %1304 = vmatmul.mubr.msk.bf16.gmra.mrb[44].mxu1 %vm231_vm0, %v348_v38 }
 0x1e4   : > { %553 = vmatprep.mubr.bf16.mxu1 %v2537_v0 }
 0x1eb   : > { %1305 = vmatmul.mubr.msk.bf16.gmra.mrb[48].mxu1 %vm231_vm0, %v349_v39 }
 0x1ec   : > { %563 = vmatprep.mubr.bf16.mxu1 %v2537_v0 }
 0x1f3   : > { %1306 = vmatmul.mubr.msk.bf16.gmra.mrb[52].mxu1 %vm231_vm0, %v350_v40 }
 0x1f4   : > { %573 = vmatprep.mubr.bf16.mxu1 %v2537_v0 }
 0x1fb   : > { %1307 = vmatmul.mubr.msk.bf16.gmra.mrb[56].mxu1 %vm231_vm0, %v351_v41 }
 0x1fc   : > { %583 = vmatprep.mubr.bf16.mxu1 %v2537_v0  ;;  %v2583_v0 = vmov 0  }
 0x203   : > { %1308 = vmatmul.mubr.msk.bf16.gmra.mrb[60].mxu1 %vm231_vm0, %v352_v42 }
 0x25e   : > { %v1898_v43 = vpop.f32.mrb[0].mxu1 }
 0x25f   : > { %v1900_v44 = vpop.f32.mrb[1].mxu1 }
 0x260   : > { %v1902_v45 = vpop.f32.mrb[2].mxu1  ;;  %v594_v46 = vmax.f32 %v1898_v43, %v1900_v44 }
 0x261   : > { %v1906_v47 = vpop.f32.mrb[3].mxu1 }
 0x262   : > { %595 = vmax.xlane.f32.xlu0 %v594_v46  ;;  %v597_v48 = vmax.f32 %v1902_v45, %v1906_v47 }
 0x264   : > { %598 = vmax.xlane.f32.xlu1 %v597_v48 }
 0x266   : > { %v1910_v49 = vpop.f32.mrb[4].mxu1 }
 0x267   : > { %v1912_v50 = vpop.f32.mrb[5].mxu1 }
 0x268   : > { %v1914_v51 = vpop.f32.mrb[6].mxu1  ;;  %v600_v52 = vmax.f32 %v1910_v49, %v1912_v50 }
 0x269   : > { %v1918_v53 = vpop.f32.mrb[7].mxu1 }
 0x26a   : > { %601 = vmax.xlane.f32.xlu0 %v600_v52  ;;  %v603_v54 = vmax.f32 %v1914_v51, %v1918_v53 }
 0x26c   : > { %604 = vmax.xlane.f32.xlu1 %v603_v54 }
 0x26e   : > { %v1922_v55 = vpop.f32.mrb[8].mxu1 }
 0x26f   : > { %v1924_v56 = vpop.f32.mrb[9].mxu1 }
 0x270   : > { %v1926_v57 = vpop.f32.mrb[10].mxu1  ;;  %v606_v58 = vmax.f32 %v1922_v55, %v1924_v56 }
 0x271   : > { %v1930_v59 = vpop.f32.mrb[11].mxu1 }
 0x272   : > { %607 = vmax.xlane.f32.xlu0 %v606_v58  ;;  %v609_v60 = vmax.f32 %v1926_v57, %v1930_v59 }
 0x274   : > { %610 = vmax.xlane.f32.xlu1 %v609_v60 }
 0x276   : > { %v1934_v61 = vpop.f32.mrb[12].mxu1 }
 0x277   : > { %v1936_v62 = vpop.f32.mrb[13].mxu1 }
 0x278   : > { %v1938_v63 = vpop.f32.mrb[14].mxu1  ;;  %v612_v1 = vmax.f32 %v1934_v61, %v1936_v62 }
 0x279   : > { %v1942_v2 = vpop.f32.mrb[15].mxu1 }
 0x27a   : > { %613 = vmax.xlane.f32.xlu0 %v612_v1  ;;  %v615_v3 = vmax.f32 %v1938_v63, %v1942_v2 }
 0x27c   : > { %616 = vmax.xlane.f32.xlu1 %v615_v3 }
 0x27e   : > { %v1946_v4 = vpop.f32.mrb[16].mxu1 }
 0x27f   : > { %v1948_v5 = vpop.f32.mrb[17].mxu1 }
 0x280   : > { %v1950_v6 = vpop.f32.mrb[18].mxu1  ;;  %v618_v7 = vmax.f32 %v1946_v4, %v1948_v5 }
 0x281   : > { %v1954_v8 = vpop.f32.mrb[19].mxu1 }
 0x282   : > { %619 = vmax.xlane.f32.xlu0 %v618_v7  ;;  %v621_v9 = vmax.f32 %v1950_v6, %v1954_v8 }
 0x284   : > { %622 = vmax.xlane.f32.xlu1 %v621_v9 }
 0x286   : > { %v1958_v10 = vpop.f32.mrb[20].mxu1 }
 0x287   : > { %v1960_v11 = vpop.f32.mrb[21].mxu1 }
 0x288   : > { %v1962_v12 = vpop.f32.mrb[22].mxu1  ;;  %v624_v13 = vmax.f32 %v1958_v10, %v1960_v11 }
 0x289   : > { %v1966_v14 = vpop.f32.mrb[23].mxu1 }
 0x28a   : > { %625 = vmax.xlane.f32.xlu0 %v624_v13  ;;  %v627_v15 = vmax.f32 %v1962_v12, %v1966_v14 }
 0x28c   : > { %628 = vmax.xlane.f32.xlu1 %v627_v15 }
 0x28e   : > { %v1970_v16 = vpop.f32.mrb[24].mxu1 }
 0x28f   : > { %v1972_v17 = vpop.f32.mrb[25].mxu1 }
 0x290   : > { %v1974_v18 = vpop.f32.mrb[26].mxu1  ;;  %v630_v19 = vmax.f32 %v1970_v16, %v1972_v17 }
 0x291   : > { %v1978_v20 = vpop.f32.mrb[27].mxu1 }
 0x292   : > { %631 = vmax.xlane.f32.xlu0 %v630_v19  ;;  %v633_v21 = vmax.f32 %v1974_v18, %v1978_v20 }
 0x294   : > { %634 = vmax.xlane.f32.xlu1 %v633_v21 }
 0x296   : > { %v1982_v22 = vpop.f32.mrb[28].mxu1 }
 0x297   : > { %v1984_v23 = vpop.f32.mrb[29].mxu1 }
 0x298   : > { %v1986_v24 = vpop.f32.mrb[30].mxu1  ;;  %v636_v25 = vmax.f32 %v1982_v22, %v1984_v23 }
 0x299   : > { %v1990_v26 = vpop.f32.mrb[31].mxu1 }
 0x29a   : > { %637 = vmax.xlane.f32.xlu0 %v636_v25  ;;  %v639_v27 = vmax.f32 %v1986_v24, %v1990_v26  ;;  %v1401_v25 = vld [vmem:[%s2533_s1 + $0x10] sm:$0xff]  }
 0x29b   : > { %1291 = vmatmul.mubr.msk.bf16.gmra.mrb[8].mxu0 %vm231_vm0, %v1401_v25 }
 0x29c   : > { %640 = vmax.xlane.f32.xlu1 %v639_v27  ;;  %306 = vmatprep.mubr.bf16.mxu0 %v2583_v0 }
 0x29e   : > { %v1994_v28 = vpop.f32.mrb[32].mxu1 }
 0x29f   : > { %v1996_v29 = vpop.f32.mrb[33].mxu1 }
 0x2a0   : > { %v1998_v30 = vpop.f32.mrb[34].mxu1  ;;  %v642_v31 = vmax.f32 %v1994_v28, %v1996_v29 }
 0x2a1   : > { %v2002_v32 = vpop.f32.mrb[35].mxu1 }
 0x2a2   : > { %2570 = vst [vmem:[#allocation9_spill] sm:$0xff] %v2002_v32  ;;  %643 = vmax.xlane.f32.xlu0 %v642_v31  ;;  %v645_v33 = vmax.f32 %v1998_v30, %v2002_v32 }
 0x2a4   : > { %646 = vmax.xlane.f32.xlu1 %v645_v33 }
 0x2a6   : > { %v2006_v34 = vpop.f32.mrb[36].mxu1 }
 0x2a7   : > { %2571 = vst [vmem:[#allocation10_spill] sm:$0xff] %v2006_v34  ;;  %v2008_v35 = vpop.f32.mrb[37].mxu1 }
 0x2a8   : > { %2572 = vst [vmem:[#allocation11_spill] sm:$0xff] %v2008_v35  ;;  %v2010_v36 = vpop.f32.mrb[38].mxu1  ;;  %v648_v37 = vmax.f32 %v2006_v34, %v2008_v35 }
 0x2a9   : > { %2573 = vst [vmem:[#allocation12_spill] sm:$0xff] %v2010_v36  ;;  %v2014_v38 = vpop.f32.mrb[39].mxu1 }
 0x2aa   : > { %2574 = vst [vmem:[#allocation13_spill] sm:$0xff] %v2014_v38  ;;  %649 = vmax.xlane.f32.xlu0 %v648_v37  ;;  %v651_v39 = vmax.f32 %v2010_v36, %v2014_v38 }
 0x2ac   : > { %652 = vmax.xlane.f32.xlu1 %v651_v39 }
 0x2ae   : > { %v2018_v40 = vpop.f32.mrb[40].mxu1 }
 0x2af   : > { %2575 = vst [vmem:[#allocation14_spill] sm:$0xff] %v2018_v40  ;;  %v2020_v41 = vpop.f32.mrb[41].mxu1 }
 0x2b0   : > { %2576 = vst [vmem:[#allocation15_spill] sm:$0xff] %v2020_v41  ;;  %v2022_v42 = vpop.f32.mrb[42].mxu1  ;;  %v654_v46 = vmax.f32 %v2018_v40, %v2020_v41 }
 0x2b1   : > { %2577 = vst [vmem:[#allocation16_spill] sm:$0xff] %v2022_v42  ;;  %v2026_v48 = vpop.f32.mrb[43].mxu1 }
 0x2b2   : > { %2578 = vst [vmem:[#allocation17_spill] sm:$0xff] %v2026_v48  ;;  %655 = vmax.xlane.f32.xlu0 %v654_v46  ;;  %v657_v52 = vmax.f32 %v2022_v42, %v2026_v48  ;;  %v1402_v48 = vld [vmem:[%s2533_s1 + $0x18] sm:$0xff]  }
 0x2b3   : > { %1292 = vmatmul.mubr.msk.bf16.gmra.mrb[12].mxu0 %vm231_vm0, %v1402_v48 }
 0x2b4   : > { %658 = vmax.xlane.f32.xlu1 %v657_v52 }
 0x2b6   : > { %v2030_v54 = vpop.f32.mrb[44].mxu1 }
 0x2b7   : > { %2579 = vst [vmem:[#allocation18_spill] sm:$0xff] %v2030_v54  ;;  %v2032_v58 = vpop.f32.mrb[45].mxu1 }
 0x2b8   : > { %2580 = vst [vmem:[#allocation19_spill] sm:$0xff] %v2032_v58  ;;  %v2034_v60 = vpop.f32.mrb[46].mxu1  ;;  %v660_v1 = vmax.f32 %v2030_v54, %v2032_v58 }
 0x2b9   : > { %2581 = vst [vmem:[#allocation20_spill] sm:$0xff] %v2034_v60  ;;  %v2038_v3 = vpop.f32.mrb[47].mxu1 }
 0x2ba   : > { %2582 = vst [vmem:[#allocation21_spill] sm:$0xff] %v2038_v3  ;;  %661 = vmax.xlane.f32.xlu0 %v660_v1  ;;  %v663_v7 = vmax.f32 %v2034_v60, %v2038_v3 }
 0x2bc   : > { %664 = vmax.xlane.f32.xlu1 %v663_v7 }
 0x2be   : > { %v2042_v9 = vpop.f32.mrb[48].mxu1 }
 0x2bf   : > { %v2044_v13 = vpop.f32.mrb[49].mxu1 }
 0x2c0   : > { %v2046_v15 = vpop.f32.mrb[50].mxu1 }
 0x2c1   : > { %v2050_v21 = vpop.f32.mrb[51].mxu1 }
 0x2c6   : > { %v2054_v27 = vpop.f32.mrb[52].mxu1 }
 0x2c7   : > { %v2056_v31 = vpop.f32.mrb[53].mxu1 }
 0x2c8   : > { %v2058_v33 = vpop.f32.mrb[54].mxu1 }
 0x2c9   : > { %v2062_v39 = vpop.f32.mrb[55].mxu1 }
 0x2ce   : > { %v2066_v52 = vpop.f32.mrb[56].mxu1 }
 0x2cf   : > { %v2068_v1 = vpop.f32.mrb[57].mxu1 }
 0x2d0   : > { %v2070_v7 = vpop.f32.mrb[58].mxu1 }
 0x2d1   : > { %v2074_v19 = vpop.f32.mrb[59].mxu1 }
 0x2d6   : > { %v2078_v37 = vpop.f32.mrb[60].mxu1 }
 0x2d7   : > { %v2080_v3 = vpop.f32.mrb[61].mxu1 }
 0x2d8   : > { %v2082_v60 = vpop.f32.mrb[62].mxu1 }
 0x2d9   : > { %v2086_v58 = vpop.f32.mrb[63].mxu1 }
 0x2ef   : > { %v596_v46 = vpop.xlane.xlu0 %595 }
 0x2f0   : > { %v690_v42 = vsub.f32 %v1898_v43, %v596_v46  ;;  %v691_v41 = vsub.f32 %v1900_v44, %v596_v46 }
 0x2f1   : > { %v599_v54 = vpop.xlane.xlu1 %598 }
 0x2f2   : > { %v754_v40 = vmul.f32 1.442695, %v690_v42  ;;  %v756_v38 = vmul.f32 1.442695, %v691_v41  ;;  %v692_v36 = vsub.f32 %v1902_v45, %v599_v54  ;;  %v693_v25 = vsub.f32 %v1906_v47, %v599_v54 }
 0x2f4   : > { %1403 = vpow2.f32 %v754_v40  ;;  %v758_v0 = vmul.f32 1.442695, %v692_v36  ;;  %v760_v35 = vmul.f32 1.442695, %v693_v25 }
 0x2f5   : > { %1405 = vpow2.f32 %v756_v38 }
 0x2f6   : > { %1407 = vpow2.f32 %v758_v0 }
 0x2f7   : > { %1409 = vpow2.f32 %v760_v35  ;;  %v602_v34 = vpop.xlane.xlu0 %601 }
 0x2f8   : > { %v694_v48 = vsub.f32 %v1910_v49, %v602_v34  ;;  %v695_v43 = vsub.f32 %v1912_v50, %v602_v34 }
 0x2f9   : > { %v605_v32 = vpop.xlane.xlu1 %604 }
 0x2fa   : > { %v762_v44 = vmul.f32 1.442695, %v694_v48  ;;  %v764_v46 = vmul.f32 1.442695, %v695_v43  ;;  %v696_v41 = vsub.f32 %v1914_v51, %v605_v32  ;;  %v697_v45 = vsub.f32 %v1918_v53, %v605_v32 }
 0x2fc   : > { %1411 = vpow2.f32 %v762_v44  ;;  %v766_v47 = vmul.f32 1.442695, %v696_v41  ;;  %v768_v40 = vmul.f32 1.442695, %v697_v45  ;;  %v2584_v44 = vmax.f32 %v2042_v9, %v2044_v13 }
 0x2fd   : > { %1413 = vpow2.f32 %v764_v46 }
 0x2fe   : > { %v2107_v36 = vpop.eup %1403  ;;  %1415 = vpow2.f32 %v766_v47 }
 0x2ff   : > { %v2109_v35 = vpop.eup %1405  ;;  %1417 = vpow2.f32 %v768_v40  ;;  %v608_v49 = vpop.xlane.xlu0 %607 }
 0x300   : > { %v2111_v38 = vpop.eup %1407  ;;  %v698_v50 = vsub.f32 %v1922_v55, %v608_v49  ;;  %v699_v34 = vsub.f32 %v1924_v56, %v608_v49  ;;  %v882_v51 = vadd.f32 %v2109_v35, %v2107_v36  ;;  %v2585_v49 = vmax.f32 %v2046_v15, %v2050_v21 }
 0x301   : > { %v2117_v53 = vpop.eup %1409  ;;  %v611_v32 = vpop.xlane.xlu1 %610 }
 0x302   : > { %v770_v42 = vmul.f32 1.442695, %v698_v50  ;;  %v772_v54 = vmul.f32 1.442695, %v699_v34  ;;  %883 = vadd.xlane.f32.xlu0 %v882_v51  ;;  %v700_v25 = vsub.f32 %v1926_v57, %v611_v32  ;;  %v701_v0 = vsub.f32 %v1930_v59, %v611_v32 }
 0x303   : > { %v885_v48 = vadd.f32 %v2117_v53, %v2111_v38 }
 0x304   : > { %1419 = vpow2.f32 %v770_v42  ;;  %v774_v55 = vmul.f32 1.442695, %v700_v25  ;;  %v776_v43 = vmul.f32 1.442695, %v701_v0  ;;  %v2586_v0 = vmax.f32 %v2054_v27, %v2056_v31 }
 0x305   : > { %1421 = vpow2.f32 %v772_v54  ;;  %886 = vadd.xlane.f32.xlu1 %v885_v48 }
 0x306   : > { %v2123_v56 = vpop.eup %1411  ;;  %1423 = vpow2.f32 %v774_v55  ;;  %667 = vmax.xlane.f32.xlu0 %v2584_v44 }
 0x307   : > { %v2128_v46 = vpop.eup %1413  ;;  %1425 = vpow2.f32 %v776_v43  ;;  %v614_v57 = vpop.xlane.xlu0 %613 }
 0x308   : > { %v2130_v59 = vpop.eup %1415  ;;  %v702_v41 = vsub.f32 %v1934_v61, %v614_v57  ;;  %v703_v45 = vsub.f32 %v1936_v62, %v614_v57  ;;  %v888_v47 = vadd.f32 %v2128_v46, %v2123_v56 }
 0x309   : > { %v2136_v40 = vpop.eup %1417  ;;  %670 = vmax.xlane.f32.xlu1 %v2585_v49  ;;  %v617_v50 = vpop.xlane.xlu1 %616 }
 0x30a   : > { %v778_v34 = vmul.f32 1.442695, %v702_v41  ;;  %v780_v51 = vmul.f32 1.442695, %v703_v45  ;;  %889 = vadd.xlane.f32.xlu0 %v888_v47  ;;  %v704_v32 = vsub.f32 %v1938_v63, %v617_v50  ;;  %v705_v42 = vsub.f32 %v1942_v2, %v617_v50 }
 0x30b   : > { %v891_v61 = vadd.f32 %v2136_v40, %v2130_v59  ;;  %v2587_v41 = vmax.f32 %v2058_v33, %v2062_v39 }
 0x30c   : > { %1427 = vpow2.f32 %v778_v34  ;;  %v782_v62 = vmul.f32 1.442695, %v704_v32  ;;  %v784_v54 = vmul.f32 1.442695, %v705_v42  ;;  %v2588_v42 = vmax.f32 %v2066_v52, %v2068_v1 }
 0x30d   : > { %1429 = vpow2.f32 %v780_v51  ;;  %892 = vadd.xlane.f32.xlu1 %v891_v61 }
 0x30e   : > { %v2145_v25 = vpop.eup %1419  ;;  %1431 = vpow2.f32 %v782_v62  ;;  %673 = vmax.xlane.f32.xlu0 %v2586_v0 }
 0x30f   : > { %v2150_v48 = vpop.eup %1421  ;;  %1433 = vpow2.f32 %v784_v54  ;;  %v620_v63 = vpop.xlane.xlu0 %619 }
 0x310   : > { %v2152_v2 = vpop.eup %1423  ;;  %v706_v55 = vsub.f32 %v1946_v4, %v620_v63  ;;  %v707_v43 = vsub.f32 %v1948_v5, %v620_v63  ;;  %v894_v44 = vadd.f32 %v2150_v48, %v2145_v25 }
 0x311   : > { %v2158_v57 = vpop.eup %1425  ;;  %676 = vmax.xlane.f32.xlu1 %v2587_v41  ;;  %v623_v45 = vpop.xlane.xlu1 %622 }
 0x312   : > { %v786_v47 = vmul.f32 1.442695, %v706_v55  ;;  %v788_v49 = vmul.f32 1.442695, %v707_v43  ;;  %895 = vadd.xlane.f32.xlu0 %v894_v44  ;;  %v708_v50 = vsub.f32 %v1950_v6, %v623_v45  ;;  %v709_v34 = vsub.f32 %v1954_v8, %v623_v45 }
 0x313   : > { %v897_v4 = vadd.f32 %v2158_v57, %v2152_v2  ;;  %v2589_v55 = vmax.f32 %v2070_v7, %v2074_v19 }
 0x314   : > { %1435 = vpow2.f32 %v786_v47  ;;  %v790_v5 = vmul.f32 1.442695, %v708_v50  ;;  %v792_v51 = vmul.f32 1.442695, %v709_v34  ;;  %v2590_v34 = vmax.f32 %v2078_v37, %v2080_v3 }
 0x315   : > { %1437 = vpow2.f32 %v788_v49  ;;  %898 = vadd.xlane.f32.xlu1 %v897_v4 }
 0x316   : > { %v2167_v32 = vpop.eup %1427  ;;  %1439 = vpow2.f32 %v790_v5  ;;  %679 = vmax.xlane.f32.xlu0 %v2588_v42 }
 0x317   : > { %v2172_v61 = vpop.eup %1429  ;;  %1441 = vpow2.f32 %v792_v51  ;;  %v626_v6 = vpop.xlane.xlu0 %625 }
 0x318   : > { %v2174_v8 = vpop.eup %1431  ;;  %v710_v62 = vsub.f32 %v1958_v10, %v626_v6  ;;  %v711_v54 = vsub.f32 %v1960_v11, %v626_v6  ;;  %v900_v0 = vadd.f32 %v2172_v61, %v2167_v32 }
 0x319   : > { %v2180_v63 = vpop.eup %1433  ;;  %682 = vmax.xlane.f32.xlu1 %v2589_v55  ;;  %v629_v43 = vpop.xlane.xlu1 %628 }
 0x31a   : > { %v794_v44 = vmul.f32 1.442695, %v710_v62  ;;  %v796_v41 = vmul.f32 1.442695, %v711_v54  ;;  %901 = vadd.xlane.f32.xlu0 %v900_v0  ;;  %v712_v45 = vsub.f32 %v1962_v12, %v629_v43  ;;  %v713_v47 = vsub.f32 %v1966_v14, %v629_v43 }
 0x31b   : > { %v903_v10 = vadd.f32 %v2180_v63, %v2174_v8  ;;  %v2591_v62 = vmax.f32 %v2082_v60, %v2086_v58 }
 0x31c   : > { %1443 = vpow2.f32 %v794_v44  ;;  %v798_v11 = vmul.f32 1.442695, %v712_v45  ;;  %v800_v49 = vmul.f32 1.442695, %v713_v47 }
 0x31d   : > { %1445 = vpow2.f32 %v796_v41  ;;  %904 = vadd.xlane.f32.xlu1 %v903_v10 }
 0x31e   : > { %v2189_v50 = vpop.eup %1435  ;;  %1447 = vpow2.f32 %v798_v11  ;;  %685 = vmax.xlane.f32.xlu0 %v2590_v34 }
 0x31f   : > { %v2194_v4 = vpop.eup %1437  ;;  %1449 = vpow2.f32 %v800_v49  ;;  %v632_v12 = vpop.xlane.xlu0 %631 }
 0x320   : > { %v2196_v14 = vpop.eup %1439  ;;  %v714_v5 = vsub.f32 %v1970_v16, %v632_v12  ;;  %v715_v51 = vsub.f32 %v1972_v17, %v632_v12  ;;  %v906_v42 = vadd.f32 %v2194_v4, %v2189_v50 }
 0x321   : > { %v2202_v6 = vpop.eup %1441  ;;  %688 = vmax.xlane.f32.xlu1 %v2591_v62  ;;  %v635_v54 = vpop.xlane.xlu1 %634 }
 0x322   : > { %v802_v0 = vmul.f32 1.442695, %v714_v5  ;;  %v804_v55 = vmul.f32 1.442695, %v715_v51  ;;  %907 = vadd.xlane.f32.xlu0 %v906_v42  ;;  %v716_v43 = vsub.f32 %v1974_v18, %v635_v54  ;;  %v717_v44 = vsub.f32 %v1978_v20, %v635_v54 }
 0x323   : > { %v909_v16 = vadd.f32 %v2202_v6, %v2196_v14 }
 0x324   : > { %1451 = vpow2.f32 %v802_v0  ;;  %v806_v17 = vmul.f32 1.442695, %v716_v43  ;;  %v808_v41 = vmul.f32 1.442695, %v717_v44 }
 0x325   : > { %1453 = vpow2.f32 %v804_v55  ;;  %910 = vadd.xlane.f32.xlu1 %v909_v16 }
 0x326   : > { %v2211_v45 = vpop.eup %1443  ;;  %1455 = vpow2.f32 %v806_v17 }
 0x327   : > { %v2213_v47 = vpop.eup %1445  ;;  %1457 = vpow2.f32 %v808_v41  ;;  %v638_v10 = vpop.xlane.xlu0 %637 }
 0x328   : > { %v2215_v11 = vpop.eup %1447  ;;  %v718_v18 = vsub.f32 %v1982_v22, %v638_v10  ;;  %v719_v20 = vsub.f32 %v1984_v23, %v638_v10  ;;  %v912_v49 = vadd.f32 %v2213_v47, %v2211_v45 }
 0x329   : > { %v2221_v34 = vpop.eup %1449  ;;  %v641_v12 = vpop.xlane.xlu1 %640 }
 0x32a   : > { %v810_v5 = vmul.f32 1.442695, %v718_v18  ;;  %v812_v51 = vmul.f32 1.442695, %v719_v20  ;;  %913 = vadd.xlane.f32.xlu0 %v912_v49  ;;  %v720_v42 = vsub.f32 %v1986_v24, %v641_v12  ;;  %v721_v62 = vsub.f32 %v1990_v26, %v641_v12  ;;  %v2592_v49 = vld [vmem:[#allocation9_spill] sm:$0xff] }
 0x32b   : > { %v915_v54 = vadd.f32 %v2221_v34, %v2215_v11 }
 0x32c   : > { %1459 = vpow2.f32 %v810_v5  ;;  %v814_v22 = vmul.f32 1.442695, %v720_v42  ;;  %v816_v0 = vmul.f32 1.442695, %v721_v62 }
 0x32d   : > { %1461 = vpow2.f32 %v812_v51  ;;  %916 = vadd.xlane.f32.xlu1 %v915_v54 }
 0x32e   : > { %v2227_v23 = vpop.eup %1451  ;;  %1463 = vpow2.f32 %v814_v22 }
 0x32f   : > { %v2229_v55 = vpop.eup %1453  ;;  %1465 = vpow2.f32 %v816_v0  ;;  %v644_v43 = vpop.xlane.xlu0 %643  ;;  %v2596_v0 = vld [vmem:[#allocation11_spill] sm:$0xff] }
 0x330   : > { %v2231_v44 = vpop.eup %1455  ;;  %v722_v24 = vsub.f32 %v1994_v28, %v644_v43  ;;  %v723_v26 = vsub.f32 %v1996_v29, %v644_v43  ;;  %v918_v16 = vadd.f32 %v2229_v55, %v2227_v23 }
 0x331   : > { %v2237_v17 = vpop.eup %1457  ;;  %v647_v41 = vpop.xlane.xlu1 %646 }
 0x332   : > { %v818_v10 = vmul.f32 1.442695, %v722_v24  ;;  %v820_v18 = vmul.f32 1.442695, %v723_v26  ;;  %919 = vadd.xlane.f32.xlu0 %v918_v16  ;;  %v724_v20 = vsub.f32 %v1998_v30, %v647_v41  ;;  %v725_v12 = vsub.f32 %v2592_v49, %v647_v41  ;;  %v2595_v30 = vld [vmem:[#allocation10_spill] sm:$0xff]  ;;  %v2599_v49 = vld [vmem:[#allocation13_spill] sm:$0xff] }
 0x333   : > { %v921_v5 = vadd.f32 %v2237_v17, %v2231_v44 }
 0x334   : > { %1467 = vpow2.f32 %v818_v10  ;;  %v822_v28 = vmul.f32 1.442695, %v724_v20  ;;  %v824_v51 = vmul.f32 1.442695, %v725_v12 }
 0x335   : > { %1469 = vpow2.f32 %v820_v18  ;;  %922 = vadd.xlane.f32.xlu1 %v921_v5  ;;  %v2598_v18 = vld [vmem:[#allocation12_spill] sm:$0xff] }
 0x336   : > { %v2243_v29 = vpop.eup %1459  ;;  %1471 = vpow2.f32 %v822_v28 }
 0x337   : > { %2593 = vst [vmem:[#allocation9_spill] sm:$0xff] %v2243_v29  ;;  %v2245_v42 = vpop.eup %1461  ;;  %1473 = vpow2.f32 %v824_v51  ;;  %v650_v62 = vpop.xlane.xlu0 %649 }
 0x338   : > { %v2247_v54 = vpop.eup %1463  ;;  %v726_v22 = vsub.f32 %v2595_v30, %v650_v62  ;;  %v727_v43 = vsub.f32 %v2596_v0, %v650_v62  ;;  %v924_v24 = vadd.f32 %v2245_v42, %v2243_v29  ;;  %v2607_v29 = vld [vmem:[#allocation17_spill] sm:$0xff] }
 0x339   : > { %2594 = vst [vmem:[#allocation22_spill] sm:$0xff] %v2247_v54  ;;  %v2253_v26 = vpop.eup %1465  ;;  %v653_v16 = vpop.xlane.xlu1 %652 }
 0x33a   : > { %2597 = vst [vmem:[#allocation10_spill] sm:$0xff] %v2253_v26  ;;  %v826_v41 = vmul.f32 1.442695, %v726_v22  ;;  %v828_v10 = vmul.f32 1.442695, %v727_v43  ;;  %925 = vadd.xlane.f32.xlu0 %v924_v24  ;;  %v728_v20 = vsub.f32 %v2598_v18, %v653_v16  ;;  %v729_v12 = vsub.f32 %v2599_v49, %v653_v16  ;;  %v2603_v43 = vld [vmem:[#allocation14_spill] sm:$0xff] }
 0x33b   : > { %v927_v5 = vadd.f32 %v2253_v26, %v2247_v54  ;;  %v2604_v16 = vld [vmem:[#allocation15_spill] sm:$0xff] }
 0x33c   : > { %1475 = vpow2.f32 %v826_v41  ;;  %v830_v28 = vmul.f32 1.442695, %v728_v20  ;;  %v832_v51 = vmul.f32 1.442695, %v729_v12 }
 0x33d   : > { %1477 = vpow2.f32 %v828_v10  ;;  %928 = vadd.xlane.f32.xlu1 %v927_v5  ;;  %v2606_v5 = vld [vmem:[#allocation16_spill] sm:$0xff] }
 0x33e   : > { %v2259_v62 = vpop.eup %1467  ;;  %1479 = vpow2.f32 %v830_v28 }
 0x33f   : > { %2600 = vst [vmem:[#allocation11_spill] sm:$0xff] %v2259_v62  ;;  %v2261_v30 = vpop.eup %1469  ;;  %1481 = vpow2.f32 %v832_v51  ;;  %v656_v22 = vpop.xlane.xlu0 %655 }
 0x340   : > { %2601 = vst [vmem:[#allocation12_spill] sm:$0xff] %v2261_v30  ;;  %v2263_v0 = vpop.eup %1471  ;;  %v730_v24 = vsub.f32 %v2603_v43, %v656_v22  ;;  %v731_v18 = vsub.f32 %v2604_v16, %v656_v22  ;;  %v930_v41 = vadd.f32 %v2261_v30, %v2259_v62 }
 0x341   : > { %2602 = vst [vmem:[#allocation13_spill] sm:$0xff] %v2263_v0  ;;  %v2269_v20 = vpop.eup %1473  ;;  %v659_v10 = vpop.xlane.xlu1 %658 }
 0x342   : > { %2605 = vst [vmem:[#allocation14_spill] sm:$0xff] %v2269_v20  ;;  %v834_v49 = vmul.f32 1.442695, %v730_v24  ;;  %v836_v12 = vmul.f32 1.442695, %v731_v18  ;;  %931 = vadd.xlane.f32.xlu0 %v930_v41  ;;  %v732_v28 = vsub.f32 %v2606_v5, %v659_v10  ;;  %v733_v51 = vsub.f32 %v2607_v29, %v659_v10  ;;  %v2608_v41 = vld [vmem:[#allocation18_spill] sm:$0xff] }
 0x343   : > { %v933_v54 = vadd.f32 %v2269_v20, %v2263_v0  ;;  %v2609_v29 = vld [vmem:[#allocation19_spill] sm:$0xff]  ;;  %v2611_v0 = vld [vmem:[#allocation21_spill] sm:$0xff] }
 0x344   : > { %1483 = vpow2.f32 %v834_v49  ;;  %v838_v43 = vmul.f32 1.442695, %v732_v28  ;;  %v840_v26 = vmul.f32 1.442695, %v733_v51 }
 0x345   : > { %1485 = vpow2.f32 %v836_v12  ;;  %934 = vadd.xlane.f32.xlu1 %v933_v54 }
 0x346   : > { %v2275_v22 = vpop.eup %1475  ;;  %1487 = vpow2.f32 %v838_v43  ;;  %v2610_v43 = vld [vmem:[#allocation20_spill] sm:$0xff] }
 0x347   : > { %v2277_v16 = vpop.eup %1477  ;;  %1489 = vpow2.f32 %v840_v26  ;;  %v662_v24 = vpop.xlane.xlu0 %661 }
 0x348   : > { %v2279_v18 = vpop.eup %1479  ;;  %v734_v5 = vsub.f32 %v2608_v41, %v662_v24  ;;  %v735_v10 = vsub.f32 %v2609_v29, %v662_v24  ;;  %v936_v49 = vadd.f32 %v2277_v16, %v2275_v22 }
 0x349   : > { %v2285_v28 = vpop.eup %1481  ;;  %v665_v12 = vpop.xlane.xlu1 %664 }
 0x34a   : > { %v842_v54 = vmul.f32 1.442695, %v734_v5  ;;  %v844_v51 = vmul.f32 1.442695, %v735_v10  ;;  %937 = vadd.xlane.f32.xlu0 %v936_v49  ;;  %v736_v62 = vsub.f32 %v2610_v43, %v665_v12  ;;  %v737_v26 = vsub.f32 %v2611_v0, %v665_v12 }
 0x34b   : > { %v939_v20 = vadd.f32 %v2285_v28, %v2279_v18 }
 0x34c   : > { %1491 = vpow2.f32 %v842_v54  ;;  %v846_v41 = vmul.f32 1.442695, %v736_v62  ;;  %v848_v30 = vmul.f32 1.442695, %v737_v26 }
 0x34d   : > { %1493 = vpow2.f32 %v844_v51  ;;  %940 = vadd.xlane.f32.xlu1 %v939_v20 }
 0x34e   : > { %v2291_v24 = vpop.eup %1483  ;;  %1495 = vpow2.f32 %v846_v41 }
 0x34f   : > { %2612 = vst [vmem:[#allocation15_spill] sm:$0xff] %v2291_v24  ;;  %v2293_v29 = vpop.eup %1485  ;;  %1497 = vpow2.f32 %v848_v30 }
 0x350   : > { %v2295_v5 = vpop.eup %1487  ;;  %v942_v10 = vadd.f32 %v2293_v29, %v2291_v24 }
 0x351   : > { %2613 = vst [vmem:[#allocation16_spill] sm:$0xff] %v2295_v5  ;;  %v2299_v0 = vpop.eup %1489 }
 0x352   : > { %2614 = vst [vmem:[#allocation17_spill] sm:$0xff] %v2299_v0  ;;  %943 = vadd.xlane.f32.xlu0 %v942_v10  ;;  %v945_v62 = vadd.f32 %v2299_v0, %v2295_v5 }
 0x354   : > { %946 = vadd.xlane.f32.xlu1 %v945_v62 }
 0x356   : > { %v2303_v49 = vpop.eup %1491 }
 0x357   : > { %2615 = vst [vmem:[#allocation18_spill] sm:$0xff] %v2303_v49  ;;  %v2305_v20 = vpop.eup %1493 }
 0x358   : > { %2616 = vst [vmem:[#allocation19_spill] sm:$0xff] %v2305_v20  ;;  %v2307_v12 = vpop.eup %1495  ;;  %v948_v30 = vadd.f32 %v2305_v20, %v2303_v49 }
 0x359   : > { %2617 = vst [vmem:[#allocation20_spill] sm:$0xff] %v2307_v12  ;;  %v2311_v54 = vpop.eup %1497 }
 0x35a   : > { %2618 = vst [vmem:[#allocation21_spill] sm:$0xff] %v2311_v54  ;;  %949 = vadd.xlane.f32.xlu0 %v948_v30  ;;  %v951_v51 = vadd.f32 %v2311_v54, %v2307_v12 }
 0x35c   : > { %952 = vadd.xlane.f32.xlu1 %v951_v51 }
 0x38f   : > { %v884_v43 = vpop.xlane.xlu0 %883 }
 0x390   : > { %1499 = vrcp.f32 %v884_v43 }
 0x392   : > { %v887_v26 = vpop.xlane.xlu1 %886 }
 0x393   : > { %1501 = vrcp.f32 %v887_v26  ;;  %v668_v41 = vpop.xlane.xlu0 %667 }
 0x394   : > { %v738_v10 = vsub.f32 %v2042_v9, %v668_v41  ;;  %v739_v62 = vsub.f32 %v2044_v13, %v668_v41 }
 0x396   : > { %v850_v24 = vmul.f32 1.442695, %v738_v10  ;;  %v852_v5 = vmul.f32 1.442695, %v739_v62  ;;  %v671_v0 = vpop.xlane.xlu1 %670 }
 0x397   : > { %v740_v49 = vsub.f32 %v2046_v15, %v671_v0  ;;  %v741_v30 = vsub.f32 %v2050_v21, %v671_v0  ;;  %v890_v20 = vpop.xlane.xlu0 %889 }
 0x398   : > { %1503 = vpow2.f32 %v850_v24 }
 0x399   : > { %1505 = vpow2.f32 %v852_v5  ;;  %v854_v51 = vmul.f32 1.442695, %v740_v49  ;;  %v856_v12 = vmul.f32 1.442695, %v741_v30 }
 0x39a   : > { %v1500_v43 = vpop.eup %1499  ;;  %1507 = vrcp.f32 %v890_v20  ;;  %v893_v26 = vpop.xlane.xlu1 %892 }
 0x39b   : > { %1509 = vpow2.f32 %v854_v51  ;;  %v674_v54 = vpop.xlane.xlu0 %673  ;;  %v1011_v15 = vmul.f32 %v1500_v43, %v2109_v35  ;;  %v1010_v21 = vmul.f32 %v1500_v43, %v2107_v36 }
 0x39c   : > { %1511 = vpow2.f32 %v856_v12  ;;  %v742_v9 = vsub.f32 %v2054_v27, %v674_v54  ;;  %v743_v13 = vsub.f32 %v2056_v31, %v674_v54 }
 0x39d   : > { %v1502_v41 = vpop.eup %1501  ;;  %1513 = vrcp.f32 %v893_v26 }
 0x39e   : > { %v858_v24 = vmul.f32 1.442695, %v742_v9  ;;  %v860_v5 = vmul.f32 1.442695, %v743_v13  ;;  %v677_v0 = vpop.xlane.xlu1 %676  ;;  %v1013_v49 = vmul.f32 %v1502_v41, %v2117_v53  ;;  %v1012_v20 = vmul.f32 %v1502_v41, %v2111_v38 }
 0x39f   : > { %v744_v10 = vsub.f32 %v2058_v33, %v677_v0  ;;  %v745_v12 = vsub.f32 %v2062_v39, %v677_v0  ;;  %v896_v27 = vpop.xlane.xlu0 %895 }
 0x3a0   : > { %1515 = vpow2.f32 %v858_v24  ;;  %v1079_v31 = vpack.c.bf16 %v1013_v49, %v1011_v15  ;;  %v1078_v54 = vpack.c.bf16 %v1012_v20, %v1010_v21 }
 0x3a1   : > { %1517 = vpow2.f32 %v860_v5  ;;  %v862_v62 = vmul.f32 1.442695, %v744_v10  ;;  %v864_v35 = vmul.f32 1.442695, %v745_v12 }
 0x3a2   : > { %v2327_v30 = vpop.eup %1503  ;;  %1519 = vrcp.f32 %v896_v27  ;;  %1110 = vmatprep.subr.bf16.mxu0 %v1079_v31  ;;  %1316 = vmatprep.subr.bf16.mxu1 %v1079_v31  ;;  %v899_v36 = vpop.xlane.xlu1 %898 }
 0x3a3   : > { %v2329_v53 = vpop.eup %1505  ;;  %1521 = vpow2.f32 %v862_v62  ;;  %1111 = vmatpush1.bf16.xpose.msra.mxu0 %v1078_v54  ;;  %1332 = vmatpush1.bf16.xpose.msra.mxu1 %v1078_v54  ;;  %v680_v33 = vpop.xlane.xlu0 %679 }
 0x3a4   : > { %v1508_v39 = vpop.eup %1507  ;;  %1523 = vpow2.f32 %v864_v35  ;;  %v746_v38 = vsub.f32 %v2066_v52, %v680_v33  ;;  %v747_v51 = vsub.f32 %v2068_v1, %v680_v33  ;;  %v954_v43 = vadd.f32 %v2329_v53, %v2327_v30 }
 0x3a5   : > { %v2335_v26 = vpop.eup %1509  ;;  %1525 = vrcp.f32 %v899_v36  ;;  %v1015_v0 = vmul.f32 %v1508_v39, %v2128_v46  ;;  %v1014_v20 = vmul.f32 %v1508_v39, %v2123_v56 }
 0x3a6   : > { %v2337_v9 = vpop.eup %1511  ;;  %v866_v13 = vmul.f32 1.442695, %v746_v38  ;;  %v868_v41 = vmul.f32 1.442695, %v747_v51  ;;  %955 = vadd.xlane.f32.xlu0 %v954_v43  ;;  %v683_v15 = vpop.xlane.xlu1 %682 }
 0x3a7   : > { %v1514_v21 = vpop.eup %1513  ;;  %v748_v24 = vsub.f32 %v2070_v7, %v683_v15  ;;  %v749_v5 = vsub.f32 %v2074_v19, %v683_v15  ;;  %v902_v52 = vpop.xlane.xlu0 %901  ;;  %v957_v1 = vadd.f32 %v2337_v9, %v2335_v26 }
 0x3a8   : > { %1527 = vpow2.f32 %v866_v13  ;;  %v1017_v49 = vmul.f32 %v1514_v21, %v2136_v40  ;;  %v1016_v10 = vmul.f32 %v1514_v21, %v2130_v59 }
 0x3a9   : > { %1529 = vpow2.f32 %v868_v41  ;;  %v870_v12 = vmul.f32 1.442695, %v748_v24  ;;  %v872_v27 = vmul.f32 1.442695, %v749_v5  ;;  %958 = vadd.xlane.f32.xlu1 %v957_v1 }
 0x3aa   : > { %v2347_v7 = vpop.eup %1515  ;;  %1531 = vrcp.f32 %v902_v52  ;;  %v1081_v19 = vpack.c.bf16 %v1017_v49, %v1015_v0  ;;  %v905_v31 = vpop.xlane.xlu1 %904  ;;  %v1080_v54 = vpack.c.bf16 %v1016_v10, %v1014_v20 }
 0x3ab   : > { %v2349_v62 = vpop.eup %1517  ;;  %1533 = vpow2.f32 %v870_v12  ;;  %v686_v46 = vpop.xlane.xlu0 %685 }
 0x3ac   : > { %v1520_v35 = vpop.eup %1519  ;;  %1535 = vpow2.f32 %v872_v27  ;;  %1112 = vmatprep.subr.bf16.mxu0 %v1081_v19  ;;  %1317 = vmatprep.subr.bf16.mxu1 %v1081_v19  ;;  %v750_v56 = vsub.f32 %v2078_v37, %v686_v46  ;;  %v751_v59 = vsub.f32 %v2080_v3, %v686_v46  ;;  %v960_v40 = vadd.f32 %v2349_v62, %v2347_v7 }
 0x3ad   : > { %v2355_v36 = vpop.eup %1521  ;;  %1537 = vrcp.f32 %v905_v31  ;;  %1113 = vmatpush1.bf16.xpose.msra.mxu0 %v1080_v54  ;;  %1333 = vmatpush1.bf16.xpose.msra.mxu1 %v1080_v54  ;;  %v1019_v15 = vmul.f32 %v1520_v35, %v2150_v48  ;;  %v1018_v24 = vmul.f32 %v1520_v35, %v2145_v25 }
 0x3ae   : > { %v2357_v33 = vpop.eup %1523  ;;  %v874_v39 = vmul.f32 1.442695, %v750_v56  ;;  %v876_v38 = vmul.f32 1.442695, %v751_v59  ;;  %961 = vadd.xlane.f32.xlu0 %v960_v40  ;;  %v689_v51 = vpop.xlane.xlu1 %688 }
 0x3af   : > { %v1526_v43 = vpop.eup %1525  ;;  %v752_v13 = vsub.f32 %v2082_v60, %v689_v51  ;;  %v753_v37 = vsub.f32 %v2086_v58, %v689_v51  ;;  %v908_v3 = vpop.xlane.xlu0 %907  ;;  %v963_v41 = vadd.f32 %v2357_v33, %v2355_v36 }
 0x3b0   : > { %1539 = vpow2.f32 %v874_v39  ;;  %v1021_v21 = vmul.f32 %v1526_v43, %v2158_v57  ;;  %v1020_v5 = vmul.f32 %v1526_v43, %v2152_v2 }
 0x3b1   : > { %1541 = vpow2.f32 %v876_v38  ;;  %v878_v52 = vmul.f32 1.442695, %v752_v13  ;;  %v880_v1 = vmul.f32 1.442695, %v753_v37  ;;  %964 = vadd.xlane.f32.xlu1 %v963_v41 }
 0x3b2   : > { %v2367_v60 = vpop.eup %1527  ;;  %1543 = vrcp.f32 %v908_v3  ;;  %v1083_v58 = vpack.c.bf16 %v1021_v21, %v1019_v15  ;;  %v911_v0 = vpop.xlane.xlu1 %910  ;;  %v1082_v49 = vpack.c.bf16 %v1020_v5, %v1018_v24 }
 0x3b3   : > { %v2369_v20 = vpop.eup %1529  ;;  %1545 = vpow2.f32 %v878_v52 }
 0x3b4   : > { %v1532_v48 = vpop.eup %1531  ;;  %1547 = vpow2.f32 %v880_v1  ;;  %1114 = vmatprep.subr.bf16.mxu0 %v1083_v58  ;;  %1318 = vmatprep.subr.bf16.mxu1 %v1083_v58  ;;  %v966_v25 = vadd.f32 %v2369_v20, %v2367_v60 }
 0x3b5   : > { %v2373_v2 = vpop.eup %1533  ;;  %1549 = vrcp.f32 %v911_v0  ;;  %1115 = vmatpush1.bf16.xpose.msra.mxu0 %v1082_v49  ;;  %1334 = vmatpush1.bf16.xpose.msra.mxu1 %v1082_v49  ;;  %v1023_v19 = vmul.f32 %v1532_v48, %v2172_v61  ;;  %v1022_v54 = vmul.f32 %v1532_v48, %v2167_v32 }
 0x3b6   : > { %v2375_v57 = vpop.eup %1535  ;;  %967 = vadd.xlane.f32.xlu0 %v966_v25 }
 0x3b7   : > { %v1538_v10 = vpop.eup %1537  ;;  %v914_v12 = vpop.xlane.xlu0 %913  ;;  %v969_v27 = vadd.f32 %v2375_v57, %v2373_v2 }
 0x3b8   : > { %v1025_v31 = vmul.f32 %v1538_v10, %v2180_v63  ;;  %v1024_v46 = vmul.f32 %v1538_v10, %v2174_v8  ;;  %1551 = vrcp.f32 %v914_v12  ;;  %v2407_v12 = vpop.f32.mrb[8].mxu0 }
 0x3b9   : > { %970 = vadd.xlane.f32.xlu1 %v969_v27 }
 0x3ba   : > { %v2383_v35 = vpop.eup %1539  ;;  %v1085_v56 = vpack.c.bf16 %v1025_v31, %v1023_v19  ;;  %v917_v59 = vpop.xlane.xlu1 %916  ;;  %v1084_v40 = vpack.c.bf16 %v1024_v46, %v1022_v54 }
 0x3bb   : > { %v2385_v39 = vpop.eup %1541  ;;  %1553 = vrcp.f32 %v917_v59  ;;  %v300_v19 = vpop.f32.mrb[9].mxu0  ;;  %v2620_v59 = vld [vmem:[#allocation22_spill] sm:$0xff] }
 0x3bc   : > { %v1544_v38 = vpop.eup %1543  ;;  %1116 = vmatprep.subr.bf16.mxu0 %v1085_v56  ;;  %1319 = vmatprep.subr.bf16.mxu1 %v1085_v56  ;;  %v972_v61 = vadd.f32 %v2385_v39, %v2383_v35 }
 0x3bd   : > { %v2389_v63 = vpop.eup %1545  ;;  %1117 = vmatpush1.bf16.xpose.msra.mxu0 %v1084_v40  ;;  %1335 = vmatpush1.bf16.xpose.msra.mxu1 %v1084_v40  ;;  %v1027_v13 = vmul.f32 %v1544_v38, %v2194_v4  ;;  %v1026_v3 = vmul.f32 %v1544_v38, %v2189_v50  ;;  %v2412_v40 = vpop.f32.mrb[10].mxu0 }
 0x3be   : > { %v2391_v32 = vpop.eup %1547  ;;  %973 = vadd.xlane.f32.xlu0 %v972_v61  ;;  %v2621_v61 = vld [vmem:[#allocation9_spill] sm:$0xff] }
 0x3bf   : > { %v1550_v8 = vpop.eup %1549  ;;  %v920_v51 = vpop.xlane.xlu0 %919  ;;  %v975_v43 = vadd.f32 %v2391_v32, %v2389_v63 }
 0x3c0   : > { %v1029_v37 = vmul.f32 %v1550_v8, %v2202_v6  ;;  %v1028_v41 = vmul.f32 %v1550_v8, %v2196_v14  ;;  %1555 = vrcp.f32 %v920_v51  ;;  %v1074_v51 = vpack.c.bf16 %v2412_v40, %v2407_v12 }
 0x3c1   : > { %976 = vadd.xlane.f32.xlu1 %v975_v43  ;;  %v304_v43 = vpop.f32.mrb[11].mxu0 }
 0x3c2   : > { %v1087_v15 = vpack.c.bf16 %v1029_v37, %v1027_v13  ;;  %v923_v21 = vpop.xlane.xlu1 %922  ;;  %v1086_v24 = vpack.c.bf16 %v1028_v41, %v1026_v3  ;;  %v1552_v5 = vpop.eup %1551  ;;  %v1075_v37 = vpack.c.bf16 %v304_v43, %v300_v19  ;;  %v2628_v43 = vld [vmem:[#allocation15_spill] sm:$0xff] }
 0x3c3   : > { %1557 = vrcp.f32 %v923_v21  ;;  %v1031_v4 = vmul.f32 %v1552_v5, %v2213_v47  ;;  %v1030_v14 = vmul.f32 %v1552_v5, %v2211_v45  ;;  %v2417_v3 = vpop.f32.mrb[12].mxu0  ;;  %v2622_v5 = vld [vmem:[#allocation12_spill] sm:$0xff] }
 0x3c4   : > { %1118 = vmatprep.subr.bf16.mxu0 %v1087_v15  ;;  %1320 = vmatprep.subr.bf16.mxu1 %v1087_v15 }
 0x3c5   : > { %v1554_v52 = vpop.eup %1553  ;;  %1119 = vmatpush1.bf16.xpose.msra.mxu0 %v1086_v24  ;;  %1336 = vmatpush1.bf16.xpose.msra.mxu1 %v1086_v24 }
 0x3c6   : > { %v1033_v6 = vmul.f32 %v1554_v52, %v2221_v34  ;;  %v1032_v50 = vmul.f32 %v1554_v52, %v2215_v11  ;;  %1142 = vmatprep.mubr.bf16.mxu0 %v1075_v37 }
 0x3c7   : > { %v926_v1 = vpop.xlane.xlu0 %925 }
 0x3c8   : > { %v1089_v58 = vpack.c.bf16 %v1033_v6, %v1031_v4  ;;  %1559 = vrcp.f32 %v926_v1  ;;  %v1088_v0 = vpack.c.bf16 %v1032_v50, %v1030_v14  ;;  %v2623_v4 = vld [vmem:[#allocation14_spill] sm:$0xff]  ;;  %v2624_v50 = vld [vmem:[#allocation13_spill] sm:$0xff] }
 0x3ca   : > { %1120 = vmatprep.subr.bf16.mxu0 %v1089_v58  ;;  %1321 = vmatprep.subr.bf16.mxu1 %v1089_v58  ;;  %v929_v49 = vpop.xlane.xlu1 %928  ;;  %v1556_v48 = vpop.eup %1555 }
 0x3cb   : > { %1561 = vrcp.f32 %v929_v49  ;;  %v1035_v47 = vmul.f32 %v1556_v48, %v2229_v55  ;;  %v1034_v45 = vmul.f32 %v1556_v48, %v2227_v23 }
 0x3cd   : > { %v1558_v25 = vpop.eup %1557  ;;  %1121 = vmatpush1.bf16.xpose.msra.mxu0 %v1088_v0  ;;  %1337 = vmatpush1.bf16.xpose.msra.mxu1 %v1088_v0  ;;  %v2625_v0 = vld [vmem:[#allocation11_spill] sm:$0xff] }
 0x3ce   : > { %v1037_v34 = vmul.f32 %v1558_v25, %v2237_v17  ;;  %v1036_v11 = vmul.f32 %v1558_v25, %v2231_v44  ;;  %v2619_v44 = vld [vmem:[#allocation10_spill] sm:$0xff] }
 0x3cf   : > { %v932_v10 = vpop.xlane.xlu0 %931 }
 0x3d0   : > { %v1091_v27 = vpack.c.bf16 %v1037_v34, %v1035_v47  ;;  %1563 = vrcp.f32 %v932_v10  ;;  %v1090_v31 = vpack.c.bf16 %v1036_v11, %v1034_v45 }
 0x3d2   : > { %1122 = vmatprep.subr.bf16.mxu0 %v1091_v27  ;;  %1322 = vmatprep.subr.bf16.mxu1 %v1091_v27  ;;  %v935_v54 = vpop.xlane.xlu1 %934  ;;  %v1560_v46 = vpop.eup %1559 }
 0x3d3   : > { %1565 = vrcp.f32 %v935_v54  ;;  %v1039_v55 = vmul.f32 %v1560_v46, %v2245_v42  ;;  %v1038_v8 = vmul.f32 %v1560_v46, %v2621_v61  ;;  %v310_v42 = vpop.f32.mrb[13].mxu0  ;;  %v2627_v61 = vld [vmem:[#allocation16_spill] sm:$0xff] }
 0x3d4   : > { %v2422_v14 = vpop.f32.mrb[14].mxu0 }
 0x3d5   : > { %v1562_v56 = vpop.eup %1561  ;;  %1123 = vmatpush1.bf16.xpose.msra.mxu0 %v1090_v31  ;;  %1338 = vmatpush1.bf16.xpose.msra.mxu1 %v1090_v31  ;;  %v1076_v48 = vpack.c.bf16 %v2422_v14, %v2417_v3  ;;  %v314_v25 = vpop.f32.mrb[15].mxu0 }
 0x3d6   : > { %v1041_v17 = vmul.f32 %v1562_v56, %v2619_v44  ;;  %v1040_v23 = vmul.f32 %v1562_v56, %v2620_v59  ;;  %v1077_v34 = vpack.c.bf16 %v314_v25, %v310_v42  ;;  %v2629_v42 = vld [vmem:[#allocation19_spill] sm:$0xff] }
 0x3d7   : > { %v938_v38 = vpop.xlane.xlu0 %937 }
 0x3d8   : > { %v1093_v13 = vpack.c.bf16 %v1041_v17, %v1039_v55  ;;  %1567 = vrcp.f32 %v938_v38  ;;  %v1092_v41 = vpack.c.bf16 %v1040_v23, %v1038_v8  ;;  %1152 = vmatprep.mubr.bf16.mxu1 %v1077_v34  ;;  %v2626_v38 = vld [vmem:[#allocation17_spill] sm:$0xff] }
 0x3da   : > { %1124 = vmatprep.subr.bf16.mxu0 %v1093_v13  ;;  %1323 = vmatprep.subr.bf16.mxu1 %v1093_v13  ;;  %v941_v15 = vpop.xlane.xlu1 %940  ;;  %v1564_v21 = vpop.eup %1563 }
 0x3db   : > { %1569 = vrcp.f32 %v941_v15  ;;  %v1043_v52 = vmul.f32 %v1564_v21, %v2622_v5  ;;  %v1042_v49 = vmul.f32 %v1564_v21, %v2625_v0  ;;  %v2630_v21 = vld [vmem:[#allocation21_spill] sm:$0xff]  ;;  %v2631_v5 = vld [vmem:[#allocation20_spill] sm:$0xff] }
 0x3dd   : > { %v1566_v24 = vpop.eup %1565  ;;  %1125 = vmatpush1.bf16.xpose.msra.mxu0 %v1092_v41  ;;  %1339 = vmatpush1.bf16.xpose.msra.mxu1 %v1092_v41 }
 0x3de   : > { %v1045_v6 = vmul.f32 %v1566_v24, %v2623_v4  ;;  %v1044_v1 = vmul.f32 %v1566_v24, %v2624_v50  ;;  %v2632_v4 = vld [vmem:[#allocation18_spill] sm:$0xff] }
 0x3df   : > { %v944_v58 = vpop.xlane.xlu0 %943 }
 0x3e0   : > { %1571 = vrcp.f32 %v944_v58  ;;  %v1095_v47 = vpack.c.bf16 %v1045_v6, %v1043_v52  ;;  %v1094_v10 = vpack.c.bf16 %v1044_v1, %v1042_v49 }
 0x3e1   : > { %v947_v11 = vpop.xlane.xlu1 %946 }
 0x3e2   : > { %1126 = vmatprep.subr.bf16.mxu0 %v1095_v47  ;;  %1324 = vmatprep.subr.bf16.mxu1 %v1095_v47  ;;  %1573 = vrcp.f32 %v947_v11  ;;  %v1568_v45 = vpop.eup %1567 }
 0x3e3   : > { %v1047_v19 = vmul.f32 %v1568_v45, %v2277_v16  ;;  %v1046_v56 = vmul.f32 %v1568_v45, %v2275_v22 }
 0x3e5   : > { %v1570_v27 = vpop.eup %1569  ;;  %1127 = vmatpush1.bf16.xpose.msra.mxu0 %v1094_v10  ;;  %1340 = vmatpush1.bf16.xpose.msra.mxu1 %v1094_v10 }
 0x3e6   : > { %v1049_v31 = vmul.f32 %v1570_v27, %v2285_v28  ;;  %v1048_v54 = vmul.f32 %v1570_v27, %v2279_v18 }
 0x3e7   : > { %v950_v46 = vpop.xlane.xlu0 %949 }
 0x3e8   : > { %1575 = vrcp.f32 %v950_v46  ;;  %v1097_v55 = vpack.c.bf16 %v1049_v31, %v1047_v19  ;;  %v1096_v17 = vpack.c.bf16 %v1048_v54, %v1046_v56 }
 0x3e9   : > { %v953_v44 = vpop.xlane.xlu1 %952 }
 0x3ea   : > { %v1572_v59 = vpop.eup %1571  ;;  %1128 = vmatprep.subr.bf16.mxu0 %v1097_v55  ;;  %1325 = vmatprep.subr.bf16.mxu1 %v1097_v55  ;;  %1577 = vrcp.f32 %v953_v44 }
 0x3eb   : > { %v1051_v16 = vmul.f32 %v1572_v59, %v2293_v29  ;;  %v1050_v22 = vmul.f32 %v1572_v59, %v2628_v43 }
 0x3ec   : > { %v1574_v23 = vpop.eup %1573 }
 0x3ed   : > { %1129 = vmatpush1.bf16.xpose.msra.mxu0 %v1096_v17  ;;  %1341 = vmatpush1.bf16.xpose.msra.mxu1 %v1096_v17  ;;  %v1053_v28 = vmul.f32 %v1574_v23, %v2626_v38  ;;  %v1052_v18 = vmul.f32 %v1574_v23, %v2627_v61 }
 0x3ef   : > { %v1099_v8 = vpack.c.bf16 %v1053_v28, %v1051_v16  ;;  %v1098_v13 = vpack.c.bf16 %v1052_v18, %v1050_v22 }
 0x3f1   : > { %1130 = vmatprep.subr.bf16.mxu0 %v1099_v8  ;;  %1326 = vmatprep.subr.bf16.mxu1 %v1099_v8 }
 0x3f2   : > { %v1576_v37 = vpop.eup %1575 }
 0x3f3   : > { %v1055_v15 = vmul.f32 %v1576_v37, %v2629_v42  ;;  %v1054_v6 = vmul.f32 %v1576_v37, %v2632_v4  ;;  %v1598_v4 = vld [vmem:[%s1841_s11 + $0x28] sm:$0xff] }
 0x3f4   : > { %v1578_v41 = vpop.eup %1577 }
 0x3f5   : > { %1131 = vmatpush1.bf16.xpose.msra.mxu0 %v1098_v13  ;;  %1342 = vmatpush1.bf16.xpose.msra.mxu1 %v1098_v13  ;;  %v1057_v24 = vmul.f32 %v1578_v41, %v2630_v21  ;;  %v1056_v29 = vmul.f32 %v1578_v41, %v2631_v5  ;;  %v1595_v13 = vld [vmem:[%s1841_s11] sm:$0xff] }
 0x3f6   : > { %v1596_v41 = vld [vmem:[%s1841_s11 + $0x20] sm:$0xff] }
 0x3f7   : > { %v1101_v52 = vpack.c.bf16 %v1057_v24, %v1055_v15  ;;  %v1100_v50 = vpack.c.bf16 %v1056_v29, %v1054_v6  ;;  %v1597_v29 = vld [vmem:[%s1841_s11 + $0x8] sm:$0xff] }
 0x3f9   : > { %1132 = vmatprep.subr.bf16.mxu0 %v1101_v52  ;;  %1327 = vmatprep.subr.bf16.mxu1 %v1101_v52 }
 0x3fd   : > { %1133 = vmatpush1.bf16.xpose.msra.mxu0 %v1100_v50  ;;  %1343 = vmatpush1.bf16.xpose.msra.mxu1 %v1100_v50 }
 0x433   : > { %v956_v1 = vpop.xlane.xlu0 %955 }
 0x434   : > { %1579 = vrcp.f32 %v956_v1 }
 0x436   : > { %v959_v58 = vpop.xlane.xlu1 %958 }
 0x437   : > { %1581 = vrcp.f32 %v959_v58  ;;  %v1599_v58 = vld [vmem:[%s1841_s11 + $0x10] sm:$0xff] }
 0x43b   : > { %v962_v0 = vpop.xlane.xlu0 %961 }
 0x43c   : > { %1583 = vrcp.f32 %v962_v0 }
 0x43e   : > { %v965_v49 = vpop.xlane.xlu1 %964  ;;  %v1580_v25 = vpop.eup %1579 }
 0x43f   : > { %1585 = vrcp.f32 %v965_v49  ;;  %v1059_v34 = vmul.f32 %v1580_v25, %v2329_v53  ;;  %v1058_v10 = vmul.f32 %v1580_v25, %v2327_v30  ;;  %v1600_v49 = vld [vmem:[%s1841_s11 + $0x30] sm:$0xff] }
 0x441   : > { %v1582_v47 = vpop.eup %1581 }
 0x442   : > { %v1061_v11 = vmul.f32 %v1582_v47, %v2337_v9  ;;  %v1060_v45 = vmul.f32 %v1582_v47, %v2335_v26  ;;  %v1601_v47 = vld [vmem:[%s1841_s11 + $0x18] sm:$0xff] }
 0x443   : > { %v968_v27 = vpop.xlane.xlu0 %967 }
 0x444   : > { %v1103_v19 = vpack.c.bf16 %v1061_v11, %v1059_v34  ;;  %v1102_v31 = vpack.c.bf16 %v1060_v45, %v1058_v10  ;;  %1587 = vrcp.f32 %v968_v27  ;;  %v1602_v11 = vld [vmem:[%s1841_s11 + $0x38] sm:$0xff] }
 0x446   : > { %1134 = vmatprep.subr.bf16.mxu0 %v1103_v19  ;;  %1328 = vmatprep.subr.bf16.mxu1 %v1103_v19  ;;  %v971_v54 = vpop.xlane.xlu1 %970  ;;  %v1584_v46 = vpop.eup %1583 }
 0x447   : > { %1589 = vrcp.f32 %v971_v54  ;;  %1135 = vmatpush1.bf16.xpose.msra.mxu0 %v1102_v31  ;;  %1344 = vmatpush1.bf16.xpose.msra.mxu1 %v1102_v31  ;;  %v1063_v53 = vmul.f32 %v1584_v46, %v2349_v62  ;;  %v1062_v30 = vmul.f32 %v1584_v46, %v2347_v7 }
 0x449   : > { %v1586_v56 = vpop.eup %1585 }
 0x44a   : > { %v1065_v9 = vmul.f32 %v1586_v56, %v2357_v33  ;;  %v1064_v26 = vmul.f32 %v1586_v56, %v2355_v36 }
 0x44b   : > { %v974_v55 = vpop.xlane.xlu0 %973 }
 0x44c   : > { %v1105_v44 = vpack.c.bf16 %v1065_v9, %v1063_v53  ;;  %v1104_v17 = vpack.c.bf16 %v1064_v26, %v1062_v30  ;;  %1591 = vrcp.f32 %v974_v55 }
 0x44e   : > { %1136 = vmatprep.subr.bf16.mxu0 %v1105_v44  ;;  %1329 = vmatprep.subr.bf16.mxu1 %v1105_v44  ;;  %v977_v59 = vpop.xlane.xlu1 %976  ;;  %v1588_v23 = vpop.eup %1587 }
 0x44f   : > { %1593 = vrcp.f32 %v977_v59  ;;  %1137 = vmatpush1.bf16.xpose.msra.mxu0 %v1104_v17  ;;  %1345 = vmatpush1.bf16.xpose.msra.mxu1 %v1104_v17  ;;  %v1067_v62 = vmul.f32 %v1588_v23, %v2369_v20  ;;  %v1066_v7 = vmul.f32 %v1588_v23, %v2367_v60 }
 0x451   : > { %v1590_v16 = vpop.eup %1589 }
 0x452   : > { %v1069_v33 = vmul.f32 %v1590_v16, %v2375_v57  ;;  %v1068_v36 = vmul.f32 %v1590_v16, %v2373_v2  ;;  %v1164_v2 = vstv %s1163_s20 }
 0x454   : > { %v1107_v38 = vpack.c.bf16 %v1069_v33, %v1067_v62  ;;  %v1106_v28 = vpack.c.bf16 %v1068_v36, %v1066_v7 }
 0x456   : > { %1138 = vmatprep.subr.bf16.mxu0 %v1107_v38  ;;  %1330 = vmatprep.subr.bf16.mxu1 %v1107_v38  ;;  %v1592_v61 = vpop.eup %1591 }
 0x457   : > { %1139 = vmatpush1.bf16.xpose.msra.mxu0 %v1106_v28  ;;  %1346 = vmatpush1.bf16.xpose.msra.mxu1 %v1106_v28  ;;  %v1071_v8 = vmul.f32 %v1592_v61, %v2385_v39  ;;  %v1070_v20 = vmul.f32 %v1592_v61, %v2383_v35 }
 0x459   : > { %v1594_v18 = vpop.eup %1593 }
 0x45a   : > { %v1073_v43 = vmul.f32 %v1594_v18, %v2391_v32  ;;  %v1072_v57 = vmul.f32 %v1594_v18, %v2389_v63 }
 0x45c   : > { %v1109_v60 = vpack.c.bf16 %v1073_v43, %v1071_v8  ;;  %v1108_v22 = vpack.c.bf16 %v1072_v57, %v1070_v20 }
 0x45e   : > { %1140 = vmatprep.subr.bf16.mxu0 %v1109_v60  ;;  %1331 = vmatprep.subr.bf16.mxu1 %v1109_v60 }
 0x45f   : > { %1141 = vmatpush1.bf16.xpose.msra.mxu0 %v1108_v22  ;;  %1347 = vmatpush1.bf16.xpose.msra.mxu1 %v1108_v22 }
 0x466   : > { %1143 = vmatmul.mubr.bf16.vlgmr.msra.gmra.mrb[16].mxu0 %v1074_v51  ;;  %1153 = vmatmul.mubr.bf16.vlgmr.msra.gmra.mrb[64].mxu1 %v1076_v48 }
 0x539   : > { %v1144_v35 = vpop.f32.mrb[16].mxu0  ;;  %v1154_v39 = vpop.f32.mrb[64].mxu1 }
 0x53a   : > { %v1165_v63 = vmul.f32 %v1164_v2, %v1144_v35  ;;  %v1169_v32 = vmul.f32 %v1164_v2, %v1154_v39  ;;  %v1146_v12 = vpop.f32.mrb[17].mxu0  ;;  %v1156_v40 = vpop.f32.mrb[65].mxu1 }
 0x53b   : > { %v1166_v51 = vmul.f32 %v1164_v2, %v1146_v12  ;;  %v1170_v3 = vmul.f32 %v1164_v2, %v1156_v40  ;;  %v1148_v14 = vpop.f32.mrb[18].mxu0  ;;  %v1158_v48 = vpop.f32.mrb[66].mxu1 }
 0x53c   : > { %v1173_v37 = vadd.f32 %v1595_v13, %v1165_v63  ;;  %v1177_v42 = vadd.f32 %v1596_v41, %v1169_v32  ;;  %v1167_v15 = vmul.f32 %v1164_v2, %v1148_v14  ;;  %v1171_v21 = vmul.f32 %v1164_v2, %v1158_v48  ;;  %v1150_v24 = vpop.f32.mrb[19].mxu0  ;;  %v1160_v5 = vpop.f32.mrb[67].mxu1 }
 0x53d   : > { %v1174_v52 = vadd.f32 %v1597_v29, %v1166_v51  ;;  %v1178_v6 = vadd.f32 %v1598_v4, %v1170_v3  ;;  %v1168_v50 = vmul.f32 %v1164_v2, %v1150_v24  ;;  %v1172_v1 = vmul.f32 %v1164_v2, %v1160_v5 }
 0x53e   : > { %1181 = vst [vmem:[%s2463_s21] sm:$0xff] %v1173_v37  ;;  %1185 = vst [vmem:[%s2463_s21 + $0x20] sm:$0xff] %v1177_v42  ;;  %v1175_v0 = vadd.f32 %v1599_v58, %v1167_v15  ;;  %v1179_v25 = vadd.f32 %v1600_v49, %v1171_v21 }
 0x53f   : > { %1182 = vst [vmem:[%s2463_s21 + $0x8] sm:$0xff] %v1174_v52  ;;  %1186 = vst [vmem:[%s2463_s21 + $0x28] sm:$0xff] %v1178_v6  ;;  %v1176_v34 = vadd.f32 %v1601_v47, %v1168_v50  ;;  %v1180_v10 = vadd.f32 %v1602_v11, %v1172_v1 }
 0x540   : > { %1183 = vst [vmem:[%s2463_s21 + $0x10] sm:$0xff] %v1175_v0  ;;  %1187 = vst [vmem:[%s2463_s21 + $0x30] sm:$0xff] %v1179_v25 }
 0x541   : > { %1184 = vst [vmem:[%s2463_s21 + $0x18] sm:$0xff] %v1176_v34  ;;  %1188 = vst [vmem:[%s2463_s21 + $0x38] sm:$0xff] %v1180_v10 }
 0x542   : > { %1646 = shalt.err (!%p1643_p2)
}
 0x543   : > { %s1647_s11 = scalar_lea.hbm %s2480_s29, 1024  ;;  %s1651_s9 = scalar_lea.hbm %s2535_s3, 2048 }
 0x544   : > { %p1648_p4 = scmp.ne.s32.totalorder %s2480_s29, %s1647_s11  ;;  %p1652_p9 = scmp.lt.u32.totalorder %s2480_s29, %s2535_s3 }
 0x545   : > { %p1653_p1 = scmp.lt.u32.totalorder %s1651_s9, %s1647_s11  ;;  %p1655_p6 = scmp.lt.u32.totalorder %s1647_s11, %s2480_s29 }
 0x546   : > { %p1649_p5 = pnand %p1648_p4, %p2633_p11 }
 0x547   : > { %p1654_p3 = por %p1653_p1, %p1652_p9 }
 0x548   : > { %p1650_p7 = pneg %p1649_p5 }
 0x549   : > { %p1656_p12 = por %p1655_p6, %p1654_p3 }
 0x54b   : > { %p1657_p13 = pnand %p1656_p12, %p1650_p7 }
 0x54d   : > { %1660 = shalt.err (!%p1657_p13)
}
 0x54e   : > { %s1706_s18 = smov 256   ;;  %s1707_s20 = smov 16  }
 0x54f   : > { %1350 = dma.vmem_to_hbm [thread:$0]  (%p2633_p11), %s2469_s23, 1024, %s2480_s29, %s1190_s30, %s1706_s18, %s1706_s18, %s1707_s20  }
 0x550 PF: > { %s1218_s21 = sand.u32 1, %s1687_s14   ;;  %p2634_p8 = scmp.ne.s32.totalorder %s2568_s26, 0 }
 0x551   : > { %p2635_p10 = scmp.ge.s32.totalorder %s1699_s17, 2  ;;  %s1219_s27 = scalar_lea.sflag [#allocation5], %s1218_s21 }
 0x553   : > { %p1357_p0 = pnand %p2635_p10, %p2634_p8 }
 0x555   : > { %1682 = dma.done.wait (!%p1357_p0), %s1219_s27, 1024  }
 0x556   : > { %1684 = vsyncadd (!%p1357_p0), %s1219_s27, 4294966272  ;;  %p17_p2 = scmp.ge.s32.totalorder %s1756_s19, 4   ;;  %s2636_s14 = smov %s1691_s15 }
 0x557   : > { %s2637_s15 = smov %s1695_s16  ;;  %s2638_s16 = smov %s1768_s22 }
 0x558   : > { %s2639_s17 = smov %s1756_s19  ;;  %19 = sbr.rel (!%p17_p2) target bundleno = 7 (0x7), region = 77 }
 0x55f   :  { %1224 = vsyncpa [#allocation4], 1 }
 0x560   :  { %1226 = vsyncpa [#allocation4 + $0x1], 1 }
 0x561   :  { %1227 = vsyncpa [#allocation5], 1 }
 0x562   :  { %1229 = vsyncpa [#allocation5 + $0x1], 1 }

</bundles_post_ra>
